<compile_context>
chip_gen: v7x
topology: tpu7x:2x2x1
jax: 0.10.0
libtpu: 0.0.40
codegen_flags: <defaults>
</compile_context>

<pallas_src>
import functools

import jax
import jax.numpy as jnp
import numpy as np
from jax.experimental import pallas as pl
from jax.experimental.pallas import tpu as pltpu


def _pub_fused_kernel(x_ref, wb1_ref, s1_ref, h1_ref, wb2_ref, s2_ref, h2_ref,
                      o_ref, xpad1, xpad2, *, D, H, W, Cin, Cmid, Cout):
    """Fused  ReLU(BN2(conv2(ReLU(BN1(conv1(x))))))  for one batch element.

    x_ref:   (D, H, W*Cin)          bf16 input block, lanes = (w, c) flattened
    wb*_ref: (9, W*Cs_in, W*Cs_out) banded conv weights per (kd, kh) tap, bf16
    s*_ref:  (1, W*Cs_out)          folded BN scale (tiled over w), f32
    h*_ref:  (1, W*Cs_out)          folded BN shift + conv bias (tiled), f32
    o_ref:   (D*H, W*Cout)          f32 output block
    xpad1:   (D+2, H+2, W*Cin)      f32 scratch, d/h zero-padded input
    xpad2:   (D+2, H+2, W*Cmid)     f32 scratch, d/h zero-padded stage-1 output
    """
    # ---------------- stage 1: conv1 + bias + BN1 + ReLU ----------------
    # In-kernel zero padding of the d/h halo (w padding is handled implicitly
    # by the banded weights, so the lane dim needs no halo / offset stores).
    xpad1[...] = jnp.zeros_like(xpad1)
    xpad1[1:1 + D, 1:1 + H, :] = x_ref[...].astype(jnp.float32)

    acc = jnp.zeros((D * H, W * Cmid), jnp.float32)
    for kd in range(3):
        for kh in range(3):
            # Sublane-offset slice only; (D, H, L) -> (D*H, L) keeps the lane dim.
            a = xpad1[kd:kd + D, kh:kh + H, :].reshape(D * H, W * Cin)
            acc += jnp.dot(a.astype(jnp.bfloat16), wb1_ref[kd * 3 + kh],
                           preferred_element_type=jnp.float32)
    y1 = jnp.maximum(acc * s1_ref[...] + h1_ref[...], 0.0)   # ReLU (spatial=False)

    # ---------------- stage 2: conv2 + bias + BN2 + ReLU ----------------
    xpad2[...] = jnp.zeros_like(xpad2)
    xpad2[1:1 + D, 1:1 + H, :] = y1.reshape(D, H, W * Cmid)

    acc2 = jnp.zeros((D * H, W * Cout), jnp.float32)
    for kd in range(3):
        for kh in range(3):
            a = xpad2[kd:kd + D, kh:kh + H, :].reshape(D * H, W * Cmid)
            acc2 += jnp.dot(a.astype(jnp.bfloat16), wb2_ref[kd * 3 + kh],
                            preferred_element_type=jnp.float32)
    o_ref[...] = jnp.maximum(acc2 * s2_ref[...] + h2_ref[...], 0.0
                             ).astype(o_ref.dtype)


def _make_banded_weights(w_dhwio, W, dtype=jnp.bfloat16):
    """(3,3,3,Ci,Co) conv kernel -> (9, W*Ci, W*Co) banded matmul weights.

    B[kd*3+kh, wp*Ci+ci, w*Co+co] = w[kd, kh, wp-w+1, ci, co] for |wp-w| <= 1,
    zero elsewhere.  Out-of-range w taps (the zero padding in w) are dropped.
    """
    _, _, _, Ci, Co = w_dhwio.shape
    wk = w_dhwio.reshape(3, 3, 3 * Ci, Co)            # row index = kw*Ci + ci
    B = jnp.zeros((3, 3, W * Ci, W * Co), jnp.float32)
    for w in range(W):
        lo = max(w - 1, 0)
        hi = min(w + 1, W - 1)
        B = B.at[:, :, lo * Ci:(hi + 1) * Ci, w * Co:(w + 1) * Co].set(
            wk[:, :, (lo - w + 1) * Ci:(hi - w + 2) * Ci, :])
    return B.reshape(9, W * Ci, W * Co).astype(dtype)


def _fold_bn(gamma, beta, running_mean, running_var, eps=1e-5):
    scale = gamma / jnp.sqrt(running_var + eps)
    shift = beta - running_mean * scale
    return scale, shift


@jax.jit
def pub_forward(x_ncdhw, params):
    """Forward pass of `pub` (eval-mode BN).  Input/output are NCDHW."""
    N, Cin, D, H, W = x_ncdhw.shape
    Cmid = params["w1"].shape[-1]
    Cout = params["w2"].shape[-1]

    # NCDHW -> (N, D, H, W*Cin), bf16 (halves HBM traffic into the kernel).
    x = jnp.transpose(x_ncdhw, (0, 2, 3, 4, 1)).reshape(N, D, H, W * Cin)
    x = x.astype(jnp.bfloat16)

    s1, sh1 = _fold_bn(params["g1"], params["be1"], params["rm1"], params["rv1"])
    s2, sh2 = _fold_bn(params["g2"], params["be2"], params["rm2"], params["rv2"])
    # Fold conv bias into the BN shift:  s*(conv + b) + sh == s*conv + (s*b + sh)
    h1 = s1 * params["b1"] + sh1
    h2 = s2 * params["b2"] + sh2

    s1t = jnp.tile(s1, W).reshape(1, W * Cmid).astype(jnp.float32)
    h1t = jnp.tile(h1, W).reshape(1, W * Cmid).astype(jnp.float32)
    s2t = jnp.tile(s2, W).reshape(1, W * Cout).astype(jnp.float32)
    h2t = jnp.tile(h2, W).reshape(1, W * Cout).astype(jnp.float32)

    wb1 = _make_banded_weights(params["w1"], W)
    wb2 = _make_banded_weights(params["w2"], W)

    kernel = functools.partial(_pub_fused_kernel, D=D, H=H, W=W,
                               Cin=Cin, Cmid=Cmid, Cout=Cout)

    out = pl.pallas_call(
        kernel,
        out_shape=jax.ShapeDtypeStruct((N, D * H, W * Cout), jnp.float32),
        grid=(N,),
        in_specs=[
            pl.BlockSpec((None, D, H, W * Cin), lambda n: (n, 0, 0, 0)),
            pl.BlockSpec((9, W * Cin, W * Cmid), lambda n: (0, 0, 0)),
            pl.BlockSpec((1, W * Cmid), lambda n: (0, 0)),
            pl.BlockSpec((1, W * Cmid), lambda n: (0, 0)),
            pl.BlockSpec((9, W * Cmid, W * Cout), lambda n: (0, 0, 0)),
            pl.BlockSpec((1, W * Cout), lambda n: (0, 0)),
            pl.BlockSpec((1, W * Cout), lambda n: (0, 0)),
        ],
        out_specs=pl.BlockSpec((None, D * H, W * Cout), lambda n: (n, 0, 0)),
        scratch_shapes=[
            pltpu.VMEM((D + 2, H + 2, W * Cin), jnp.float32),
            pltpu.VMEM((D + 2, H + 2, W * Cmid), jnp.float32),
        ],
        compiler_params=pltpu.CompilerParams(
            dimension_semantics=("parallel",),
            vmem_limit_bytes=32 * 1024 * 1024),
    )(x, wb1, s1t, h1t, wb2, s2t, h2t)

    out = out.reshape(N, D, H, W, Cout)
    return jnp.transpose(out, (0, 4, 1, 2, 3))      # -> NCDHW


def make_pub_params(key, in_channels, out_channels):
    """Deterministic synthetic parameters matching nn.Conv3d / nn.BatchNorm3d shapes."""
    inter = out_channels if in_channels > out_channels else out_channels // 2
    ks = jax.random.split(key, 10)
    p = {}
    p["w1"] = 0.1 * jax.random.normal(ks[0], (3, 3, 3, in_channels, inter), jnp.float32)
    p["b1"] = 0.05 * jax.random.normal(ks[1], (inter,), jnp.float32)
    p["g1"] = 1.0 + 0.1 * jax.random.normal(ks[2], (inter,), jnp.float32)
    p["be1"] = 0.1 * jax.random.normal(ks[3], (inter,), jnp.float32)
    p["rm1"] = 0.05 * jax.random.normal(ks[4], (inter,), jnp.float32)
    p["rv1"] = 1.0 + 0.1 * jnp.abs(jax.random.normal(ks[5], (inter,), jnp.float32))
    p["w2"] = 0.1 * jax.random.normal(ks[6], (3, 3, 3, inter, out_channels), jnp.float32)
    p["b2"] = 0.05 * jax.random.normal(ks[7], (out_channels,), jnp.float32)
    p["g2"] = 1.0 + 0.1 * jax.random.normal(ks[8], (out_channels,), jnp.float32)
    p["be2"] = 0.1 * jax.random.normal(ks[9], (out_channels,), jnp.float32)
    p["rm2"] = jnp.zeros((out_channels,), jnp.float32)
    p["rv2"] = jnp.ones((out_channels,), jnp.float32)
    return p


def _reference_forward(x_ncdhw, params):
    """Pure-JAX reference (lax.conv) at the same numerical precision the kernel
    uses (bf16 inputs/weights/intermediate, f32 accumulation)."""
    f32 = jnp.float32
    x = jnp.transpose(x_ncdhw, (0, 2, 3, 4, 1)).astype(jnp.bfloat16).astype(f32)
    w1 = params["w1"].astype(jnp.bfloat16).astype(f32)
    w2 = params["w2"].astype(jnp.bfloat16).astype(f32)
    dn = jax.lax.conv_dimension_numbers(x.shape, w1.shape, ("NDHWC", "DHWIO", "NDHWC"))

    def block(x, w, b, g, be, rm, rv):
        y = jax.lax.conv_general_dilated(
            x, w, window_strides=(1, 1, 1),
            padding=((1, 1), (1, 1), (1, 1)), dimension_numbers=dn,
            precision=jax.lax.Precision.HIGHEST)
        y = y + b
        s, sh = _fold_bn(g, be, rm, rv)
        y = y * s + sh
        return jnp.maximum(y, 0.0)

    y = block(x, w1, params["b1"], params["g1"], params["be1"],
              params["rm1"], params["rv1"])
    y = y.astype(jnp.bfloat16).astype(f32)   # mirror kernel's bf16 intermediate
    y = block(y, w2, params["b2"], params["g2"], params["be2"],
              params["rm2"], params["rv2"])
    return jnp.transpose(y, (0, 4, 1, 2, 3))


if __name__ == "__main__":
    key = jax.random.PRNGKey(0)
    k_x, k_p = jax.random.split(key)

    # Small shapes: batch=2, in_channels=4, out_channels=8, spatial 8^3 (NCDHW).
    N, Cin, Cout = 2, 4, 8
    D = H = W = 8
    x = jax.random.normal(k_x, (N, Cin, D, H, W), jnp.float32)
    params = make_pub_params(k_p, Cin, Cout)

    out = jax.block_until_ready(pub_forward(x, params))
    ref = jax.block_until_ready(_reference_forward(x, params))

    assert out.shape == (N, Cout, D, H, W), out.shape
    # bf16 MXU inputs + bf16 intermediate => small tolerance above pure f32.
    np.testing.assert_allclose(np.asarray(out), np.asarray(ref),
                               rtol=5e-3, atol=5e-3)

    print("KERNEL_OK")
</pallas_src>

<mosaic_0001>
module attributes {stable_mosaic.version = 11 : i64} {
  func.func @_pub_fused_kernel(%arg0: i32, %arg1: memref<1x8x8x32xbf16, #tpu.memory_space<vmem>>, %arg2: memref<9x32x32xbf16, #tpu.memory_space<vmem>>, %arg3: memref<1x32xf32, #tpu.memory_space<vmem>>, %arg4: memref<1x32xf32, #tpu.memory_space<vmem>>, %arg5: memref<9x32x64xbf16, #tpu.memory_space<vmem>>, %arg6: memref<1x64xf32, #tpu.memory_space<vmem>>, %arg7: memref<1x64xf32, #tpu.memory_space<vmem>>, %arg8: memref<1x64x64xf32, #tpu.memory_space<vmem>>, %arg9: memref<10x10x32xf32, #tpu.memory_space<vmem>>, %arg10: memref<10x10x32xf32, #tpu.memory_space<vmem>>) attributes {dimension_semantics = [#tpu.dimension_semantics<parallel>], iteration_bounds = array<i64: 2>, scalar_prefetch = 0 : i64, scratch_operands = 2 : i64, tpu.core_type = #tpu.core_type<tc>, window_params = [{transform_indices = @transform_0, window_bounds = array<i64: 1, 8, 8, 32>}, {pipeline_mode = #tpu.pipeline_mode<synchronous>, transform_indices = @transform_1, window_bounds = array<i64: 9, 32, 32>}, {pipeline_mode = #tpu.pipeline_mode<synchronous>, transform_indices = @transform_2, window_bounds = array<i64: 1, 32>}, {pipeline_mode = #tpu.pipeline_mode<synchronous>, transform_indices = @transform_3, window_bounds = array<i64: 1, 32>}, {pipeline_mode = #tpu.pipeline_mode<synchronous>, transform_indices = @transform_4, window_bounds = array<i64: 9, 32, 64>}, {pipeline_mode = #tpu.pipeline_mode<synchronous>, transform_indices = @transform_5, window_bounds = array<i64: 1, 64>}, {pipeline_mode = #tpu.pipeline_mode<synchronous>, transform_indices = @transform_6, window_bounds = array<i64: 1, 64>}, {transform_indices = @transform_7, window_bounds = array<i64: 1, 64, 64>}]} {
    %cst = arith.constant 0.000000e+00 : f32
    %0 = vector.broadcast %cst : f32 to vector<10x10x32xf32>
    %c0 = arith.constant 0 : index
    %c0_0 = arith.constant 0 : index
    %c0_1 = arith.constant 0 : index
    %1 = vector.load %arg9[%c0, %c0_0, %c0_1] : memref<10x10x32xf32, #tpu.memory_space<vmem>>, vector<10x10x32xf32>
    tpu.vector_store %arg9[%c0, %c0_0, %c0_1], %0 {strides = array<i32>} : memref<10x10x32xf32, #tpu.memory_space<vmem>>, vector<10x10x32xf32>,
    %c0_2 = arith.constant 0 : index
    %c0_3 = arith.constant 0 : index
    %c0_4 = arith.constant 0 : index
    %c0_5 = arith.constant 0 : index
    %2 = vector.load %arg1[%c0_2, %c0_3, %c0_4, %c0_5] : memref<1x8x8x32xbf16, #tpu.memory_space<vmem>>, vector<1x8x8x32xbf16>
    %3 = vector.shape_cast %2 : vector<1x8x8x32xbf16> to vector<8x8x32xbf16>
    %4 = arith.extf %3 : vector<8x8x32xbf16> to vector<8x8x32xf32>
    %c1 = arith.constant 1 : index
    %c1_6 = arith.constant 1 : index
    %c0_7 = arith.constant 0 : index
    %5 = vector.load %arg9[%c1, %c1_6, %c0_7] : memref<10x10x32xf32, #tpu.memory_space<vmem>>, vector<8x8x32xf32>
    tpu.vector_store %arg9[%c1, %c1_6, %c0_7], %4 {strides = array<i32>} : memref<10x10x32xf32, #tpu.memory_space<vmem>>, vector<8x8x32xf32>,
    %cst_8 = arith.constant 0.000000e+00 : f32
    %6 = vector.broadcast %cst_8 : f32 to vector<64x32xf32>
    %c0_9 = arith.constant 0 : index
    %c0_10 = arith.constant 0 : index
    %c0_11 = arith.constant 0 : index
    %7 = vector.load %arg9[%c0_9, %c0_10, %c0_11] : memref<10x10x32xf32, #tpu.memory_space<vmem>>, vector<8x8x32xf32>
    %8 = vector.shape_cast %7 : vector<8x8x32xf32> to vector<64x32xf32>
    %9 = arith.truncf %8 : vector<64x32xf32> to vector<64x32xbf16>
    %c0_12 = arith.constant 0 : index
    %c0_13 = arith.constant 0 : index
    %c0_14 = arith.constant 0 : index
    %10 = vector.load %arg2[%c0_12, %c0_13, %c0_14] : memref<9x32x32xbf16, #tpu.memory_space<vmem>>, vector<1x32x32xbf16>
    %11 = vector.shape_cast %10 : vector<1x32x32xbf16> to vector<32x32xbf16>
    %cst_15 = arith.constant dense<0.000000e+00> : vector<64x32xf32>
    %12 = tpu.matmul %9, %11, %cst_15 {dimension_numbers = #tpu.dot_dimension_numbers<[1], [0], [0], [1], [0, 0, 1, 1], [], []>} : vector<64x32xbf16>, vector<32x32xbf16>, vector<64x32xf32> -> vector<64x32xf32>
    %13 = arith.addf %6, %12 : vector<64x32xf32>
    %c0_16 = arith.constant 0 : index
    %c1_17 = arith.constant 1 : index
    %c0_18 = arith.constant 0 : index
    %14 = vector.load %arg9[%c0_16, %c1_17, %c0_18] : memref<10x10x32xf32, #tpu.memory_space<vmem>>, vector<8x8x32xf32>
    %15 = vector.shape_cast %14 : vector<8x8x32xf32> to vector<64x32xf32>
    %16 = arith.truncf %15 : vector<64x32xf32> to vector<64x32xbf16>
    %c1_19 = arith.constant 1 : index
    %c0_20 = arith.constant 0 : index
    %c0_21 = arith.constant 0 : index
    %17 = vector.load %arg2[%c1_19, %c0_20, %c0_21] : memref<9x32x32xbf16, #tpu.memory_space<vmem>>, vector<1x32x32xbf16>
    %18 = vector.shape_cast %17 : vector<1x32x32xbf16> to vector<32x32xbf16>
    %cst_22 = arith.constant dense<0.000000e+00> : vector<64x32xf32>
    %19 = tpu.matmul %16, %18, %cst_22 {dimension_numbers = #tpu.dot_dimension_numbers<[1], [0], [0], [1], [0, 0, 1, 1], [], []>} : vector<64x32xbf16>, vector<32x32xbf16>, vector<64x32xf32> -> vector<64x32xf32>
    %20 = arith.addf %13, %19 : vector<64x32xf32>
    %c0_23 = arith.constant 0 : index
    %c2 = arith.constant 2 : index
    %c0_24 = arith.constant 0 : index
    %21 = vector.load %arg9[%c0_23, %c2, %c0_24] : memref<10x10x32xf32, #tpu.memory_space<vmem>>, vector<8x8x32xf32>
    %22 = vector.shape_cast %21 : vector<8x8x32xf32> to vector<64x32xf32>
    %23 = arith.truncf %22 : vector<64x32xf32> to vector<64x32xbf16>
    %c2_25 = arith.constant 2 : index
    %c0_26 = arith.constant 0 : index
    %c0_27 = arith.constant 0 : index
    %24 = vector.load %arg2[%c2_25, %c0_26, %c0_27] : memref<9x32x32xbf16, #tpu.memory_space<vmem>>, vector<1x32x32xbf16>
    %25 = vector.shape_cast %24 : vector<1x32x32xbf16> to vector<32x32xbf16>
    %cst_28 = arith.constant dense<0.000000e+00> : vector<64x32xf32>
    %26 = tpu.matmul %23, %25, %cst_28 {dimension_numbers = #tpu.dot_dimension_numbers<[1], [0], [0], [1], [0, 0, 1, 1], [], []>} : vector<64x32xbf16>, vector<32x32xbf16>, vector<64x32xf32> -> vector<64x32xf32>
    %27 = arith.addf %20, %26 : vector<64x32xf32>
    %c1_29 = arith.constant 1 : index
    %c0_30 = arith.constant 0 : index
    %c0_31 = arith.constant 0 : index
    %28 = vector.load %arg9[%c1_29, %c0_30, %c0_31] : memref<10x10x32xf32, #tpu.memory_space<vmem>>, vector<8x8x32xf32>
    %29 = vector.shape_cast %28 : vector<8x8x32xf32> to vector<64x32xf32>
    %30 = arith.truncf %29 : vector<64x32xf32> to vector<64x32xbf16>
    %c3 = arith.constant 3 : index
    %c0_32 = arith.constant 0 : index
    %c0_33 = arith.constant 0 : index
    %31 = vector.load %arg2[%c3, %c0_32, %c0_33] : memref<9x32x32xbf16, #tpu.memory_space<vmem>>, vector<1x32x32xbf16>
    %32 = vector.shape_cast %31 : vector<1x32x32xbf16> to vector<32x32xbf16>
    %cst_34 = arith.constant dense<0.000000e+00> : vector<64x32xf32>
    %33 = tpu.matmul %30, %32, %cst_34 {dimension_numbers = #tpu.dot_dimension_numbers<[1], [0], [0], [1], [0, 0, 1, 1], [], []>} : vector<64x32xbf16>, vector<32x32xbf16>, vector<64x32xf32> -> vector<64x32xf32>
    %34 = arith.addf %27, %33 : vector<64x32xf32>
    %c1_35 = arith.constant 1 : index
    %c1_36 = arith.constant 1 : index
    %c0_37 = arith.constant 0 : index
    %35 = vector.load %arg9[%c1_35, %c1_36, %c0_37] : memref<10x10x32xf32, #tpu.memory_space<vmem>>, vector<8x8x32xf32>
    %36 = vector.shape_cast %35 : vector<8x8x32xf32> to vector<64x32xf32>
    %37 = arith.truncf %36 : vector<64x32xf32> to vector<64x32xbf16>
    %c4 = arith.constant 4 : index
    %c0_38 = arith.constant 0 : index
    %c0_39 = arith.constant 0 : index
    %38 = vector.load %arg2[%c4, %c0_38, %c0_39] : memref<9x32x32xbf16, #tpu.memory_space<vmem>>, vector<1x32x32xbf16>
    %39 = vector.shape_cast %38 : vector<1x32x32xbf16> to vector<32x32xbf16>
    %cst_40 = arith.constant dense<0.000000e+00> : vector<64x32xf32>
    %40 = tpu.matmul %37, %39, %cst_40 {dimension_numbers = #tpu.dot_dimension_numbers<[1], [0], [0], [1], [0, 0, 1, 1], [], []>} : vector<64x32xbf16>, vector<32x32xbf16>, vector<64x32xf32> -> vector<64x32xf32>
    %41 = arith.addf %34, %40 : vector<64x32xf32>
    %c1_41 = arith.constant 1 : index
    %c2_42 = arith.constant 2 : index
    %c0_43 = arith.constant 0 : index
    %42 = vector.load %arg9[%c1_41, %c2_42, %c0_43] : memref<10x10x32xf32, #tpu.memory_space<vmem>>, vector<8x8x32xf32>
    %43 = vector.shape_cast %42 : vector<8x8x32xf32> to vector<64x32xf32>
    %44 = arith.truncf %43 : vector<64x32xf32> to vector<64x32xbf16>
    %c5 = arith.constant 5 : index
    %c0_44 = arith.constant 0 : index
    %c0_45 = arith.constant 0 : index
    %45 = vector.load %arg2[%c5, %c0_44, %c0_45] : memref<9x32x32xbf16, #tpu.memory_space<vmem>>, vector<1x32x32xbf16>
    %46 = vector.shape_cast %45 : vector<1x32x32xbf16> to vector<32x32xbf16>
    %cst_46 = arith.constant dense<0.000000e+00> : vector<64x32xf32>
    %47 = tpu.matmul %44, %46, %cst_46 {dimension_numbers = #tpu.dot_dimension_numbers<[1], [0], [0], [1], [0, 0, 1, 1], [], []>} : vector<64x32xbf16>, vector<32x32xbf16>, vector<64x32xf32> -> vector<64x32xf32>
    %48 = arith.addf %41, %47 : vector<64x32xf32>
    %c2_47 = arith.constant 2 : index
    %c0_48 = arith.constant 0 : index
    %c0_49 = arith.constant 0 : index
    %49 = vector.load %arg9[%c2_47, %c0_48, %c0_49] : memref<10x10x32xf32, #tpu.memory_space<vmem>>, vector<8x8x32xf32>
    %50 = vector.shape_cast %49 : vector<8x8x32xf32> to vector<64x32xf32>
    %51 = arith.truncf %50 : vector<64x32xf32> to vector<64x32xbf16>
    %c6 = arith.constant 6 : index
    %c0_50 = arith.constant 0 : index
    %c0_51 = arith.constant 0 : index
    %52 = vector.load %arg2[%c6, %c0_50, %c0_51] : memref<9x32x32xbf16, #tpu.memory_space<vmem>>, vector<1x32x32xbf16>
    %53 = vector.shape_cast %52 : vector<1x32x32xbf16> to vector<32x32xbf16>
    %cst_52 = arith.constant dense<0.000000e+00> : vector<64x32xf32>
    %54 = tpu.matmul %51, %53, %cst_52 {dimension_numbers = #tpu.dot_dimension_numbers<[1], [0], [0], [1], [0, 0, 1, 1], [], []>} : vector<64x32xbf16>, vector<32x32xbf16>, vector<64x32xf32> -> vector<64x32xf32>
    %55 = arith.addf %48, %54 : vector<64x32xf32>
    %c2_53 = arith.constant 2 : index
    %c1_54 = arith.constant 1 : index
    %c0_55 = arith.constant 0 : index
    %56 = vector.load %arg9[%c2_53, %c1_54, %c0_55] : memref<10x10x32xf32, #tpu.memory_space<vmem>>, vector<8x8x32xf32>
    %57 = vector.shape_cast %56 : vector<8x8x32xf32> to vector<64x32xf32>
    %58 = arith.truncf %57 : vector<64x32xf32> to vector<64x32xbf16>
    %c7 = arith.constant 7 : index
    %c0_56 = arith.constant 0 : index
    %c0_57 = arith.constant 0 : index
    %59 = vector.load %arg2[%c7, %c0_56, %c0_57] : memref<9x32x32xbf16, #tpu.memory_space<vmem>>, vector<1x32x32xbf16>
    %60 = vector.shape_cast %59 : vector<1x32x32xbf16> to vector<32x32xbf16>
    %cst_58 = arith.constant dense<0.000000e+00> : vector<64x32xf32>
    %61 = tpu.matmul %58, %60, %cst_58 {dimension_numbers = #tpu.dot_dimension_numbers<[1], [0], [0], [1], [0, 0, 1, 1], [], []>} : vector<64x32xbf16>, vector<32x32xbf16>, vector<64x32xf32> -> vector<64x32xf32>
    %62 = arith.addf %55, %61 : vector<64x32xf32>
    %c2_59 = arith.constant 2 : index
    %c2_60 = arith.constant 2 : index
    %c0_61 = arith.constant 0 : index
    %63 = vector.load %arg9[%c2_59, %c2_60, %c0_61] : memref<10x10x32xf32, #tpu.memory_space<vmem>>, vector<8x8x32xf32>
    %64 = vector.shape_cast %63 : vector<8x8x32xf32> to vector<64x32xf32>
    %65 = arith.truncf %64 : vector<64x32xf32> to vector<64x32xbf16>
    %c8 = arith.constant 8 : index
    %c0_62 = arith.constant 0 : index
    %c0_63 = arith.constant 0 : index
    %66 = vector.load %arg2[%c8, %c0_62, %c0_63] : memref<9x32x32xbf16, #tpu.memory_space<vmem>>, vector<1x32x32xbf16>
    %67 = vector.shape_cast %66 : vector<1x32x32xbf16> to vector<32x32xbf16>
    %cst_64 = arith.constant dense<0.000000e+00> : vector<64x32xf32>
    %68 = tpu.matmul %65, %67, %cst_64 {dimension_numbers = #tpu.dot_dimension_numbers<[1], [0], [0], [1], [0, 0, 1, 1], [], []>} : vector<64x32xbf16>, vector<32x32xbf16>, vector<64x32xf32> -> vector<64x32xf32>
    %69 = arith.addf %62, %68 : vector<64x32xf32>
    %c0_65 = arith.constant 0 : index
    %c0_66 = arith.constant 0 : index
    %70 = vector.load %arg3[%c0_65, %c0_66] : memref<1x32xf32, #tpu.memory_space<vmem>>, vector<1x32xf32>
    %71 = vector.broadcast %70 : vector<1x32xf32> to vector<64x32xf32>
    %72 = arith.mulf %69, %71 : vector<64x32xf32>
    %c0_67 = arith.constant 0 : index
    %c0_68 = arith.constant 0 : index
    %73 = vector.load %arg4[%c0_67, %c0_68] : memref<1x32xf32, #tpu.memory_space<vmem>>, vector<1x32xf32>
    %74 = vector.broadcast %73 : vector<1x32xf32> to vector<64x32xf32>
    %75 = arith.addf %72, %74 : vector<64x32xf32>
    %cst_69 = arith.constant 0.000000e+00 : f32
    %76 = vector.broadcast %cst_69 : f32 to vector<64x32xf32>
    %77 = arith.maximumf %75, %76 : vector<64x32xf32>
    %cst_70 = arith.constant 0.000000e+00 : f32
    %78 = vector.broadcast %cst_70 : f32 to vector<10x10x32xf32>
    %c0_71 = arith.constant 0 : index
    %c0_72 = arith.constant 0 : index
    %c0_73 = arith.constant 0 : index
    %79 = vector.load %arg10[%c0_71, %c0_72, %c0_73] : memref<10x10x32xf32, #tpu.memory_space<vmem>>, vector<10x10x32xf32>
    tpu.vector_store %arg10[%c0_71, %c0_72, %c0_73], %78 {strides = array<i32>} : memref<10x10x32xf32, #tpu.memory_space<vmem>>, vector<10x10x32xf32>,
    %80 = vector.shape_cast %77 : vector<64x32xf32> to vector<8x8x32xf32>
    %c1_74 = arith.constant 1 : index
    %c1_75 = arith.constant 1 : index
    %c0_76 = arith.constant 0 : index
    %81 = vector.load %arg10[%c1_74, %c1_75, %c0_76] : memref<10x10x32xf32, #tpu.memory_space<vmem>>, vector<8x8x32xf32>
    tpu.vector_store %arg10[%c1_74, %c1_75, %c0_76], %80 {strides = array<i32>} : memref<10x10x32xf32, #tpu.memory_space<vmem>>, vector<8x8x32xf32>,
    %cst_77 = arith.constant 0.000000e+00 : f32
    %82 = vector.broadcast %cst_77 : f32 to vector<64x64xf32>
    %c0_78 = arith.constant 0 : index
    %c0_79 = arith.constant 0 : index
    %c0_80 = arith.constant 0 : index
    %83 = vector.load %arg10[%c0_78, %c0_79, %c0_80] : memref<10x10x32xf32, #tpu.memory_space<vmem>>, vector<8x8x32xf32>
    %84 = vector.shape_cast %83 : vector<8x8x32xf32> to vector<64x32xf32>
    %85 = arith.truncf %84 : vector<64x32xf32> to vector<64x32xbf16>
    %c0_81 = arith.constant 0 : index
    %c0_82 = arith.constant 0 : index
    %c0_83 = arith.constant 0 : index
    %86 = vector.load %arg5[%c0_81, %c0_82, %c0_83] : memref<9x32x64xbf16, #tpu.memory_space<vmem>>, vector<1x32x64xbf16>
    %87 = vector.shape_cast %86 : vector<1x32x64xbf16> to vector<32x64xbf16>
    %cst_84 = arith.constant dense<0.000000e+00> : vector<64x64xf32>
    %88 = tpu.matmul %85, %87, %cst_84 {dimension_numbers = #tpu.dot_dimension_numbers<[1], [0], [0], [1], [0, 0, 1, 1], [], []>} : vector<64x32xbf16>, vector<32x64xbf16>, vector<64x64xf32> -> vector<64x64xf32>
    %89 = arith.addf %82, %88 : vector<64x64xf32>
    %c0_85 = arith.constant 0 : index
    %c1_86 = arith.constant 1 : index
    %c0_87 = arith.constant 0 : index
    %90 = vector.load %arg10[%c0_85, %c1_86, %c0_87] : memref<10x10x32xf32, #tpu.memory_space<vmem>>, vector<8x8x32xf32>
    %91 = vector.shape_cast %90 : vector<8x8x32xf32> to vector<64x32xf32>
    %92 = arith.truncf %91 : vector<64x32xf32> to vector<64x32xbf16>
    %c1_88 = arith.constant 1 : index
    %c0_89 = arith.constant 0 : index
    %c0_90 = arith.constant 0 : index
    %93 = vector.load %arg5[%c1_88, %c0_89, %c0_90] : memref<9x32x64xbf16, #tpu.memory_space<vmem>>, vector<1x32x64xbf16>
    %94 = vector.shape_cast %93 : vector<1x32x64xbf16> to vector<32x64xbf16>
    %cst_91 = arith.constant dense<0.000000e+00> : vector<64x64xf32>
    %95 = tpu.matmul %92, %94, %cst_91 {dimension_numbers = #tpu.dot_dimension_numbers<[1], [0], [0], [1], [0, 0, 1, 1], [], []>} : vector<64x32xbf16>, vector<32x64xbf16>, vector<64x64xf32> -> vector<64x64xf32>
    %96 = arith.addf %89, %95 : vector<64x64xf32>
    %c0_92 = arith.constant 0 : index
    %c2_93 = arith.constant 2 : index
    %c0_94 = arith.constant 0 : index
    %97 = vector.load %arg10[%c0_92, %c2_93, %c0_94] : memref<10x10x32xf32, #tpu.memory_space<vmem>>, vector<8x8x32xf32>
    %98 = vector.shape_cast %97 : vector<8x8x32xf32> to vector<64x32xf32>
    %99 = arith.truncf %98 : vector<64x32xf32> to vector<64x32xbf16>
    %c2_95 = arith.constant 2 : index
    %c0_96 = arith.constant 0 : index
    %c0_97 = arith.constant 0 : index
    %100 = vector.load %arg5[%c2_95, %c0_96, %c0_97] : memref<9x32x64xbf16, #tpu.memory_space<vmem>>, vector<1x32x64xbf16>
    %101 = vector.shape_cast %100 : vector<1x32x64xbf16> to vector<32x64xbf16>
    %cst_98 = arith.constant dense<0.000000e+00> : vector<64x64xf32>
    %102 = tpu.matmul %99, %101, %cst_98 {dimension_numbers = #tpu.dot_dimension_numbers<[1], [0], [0], [1], [0, 0, 1, 1], [], []>} : vector<64x32xbf16>, vector<32x64xbf16>, vector<64x64xf32> -> vector<64x64xf32>
    %103 = arith.addf %96, %102 : vector<64x64xf32>
    %c1_99 = arith.constant 1 : index
    %c0_100 = arith.constant 0 : index
    %c0_101 = arith.constant 0 : index
    %104 = vector.load %arg10[%c1_99, %c0_100, %c0_101] : memref<10x10x32xf32, #tpu.memory_space<vmem>>, vector<8x8x32xf32>
    %105 = vector.shape_cast %104 : vector<8x8x32xf32> to vector<64x32xf32>
    %106 = arith.truncf %105 : vector<64x32xf32> to vector<64x32xbf16>
    %c3_102 = arith.constant 3 : index
    %c0_103 = arith.constant 0 : index
    %c0_104 = arith.constant 0 : index
    %107 = vector.load %arg5[%c3_102, %c0_103, %c0_104] : memref<9x32x64xbf16, #tpu.memory_space<vmem>>, vector<1x32x64xbf16>
    %108 = vector.shape_cast %107 : vector<1x32x64xbf16> to vector<32x64xbf16>
    %cst_105 = arith.constant dense<0.000000e+00> : vector<64x64xf32>
    %109 = tpu.matmul %106, %108, %cst_105 {dimension_numbers = #tpu.dot_dimension_numbers<[1], [0], [0], [1], [0, 0, 1, 1], [], []>} : vector<64x32xbf16>, vector<32x64xbf16>, vector<64x64xf32> -> vector<64x64xf32>
    %110 = arith.addf %103, %109 : vector<64x64xf32>
    %c1_106 = arith.constant 1 : index
    %c1_107 = arith.constant 1 : index
    %c0_108 = arith.constant 0 : index
    %111 = vector.load %arg10[%c1_106, %c1_107, %c0_108] : memref<10x10x32xf32, #tpu.memory_space<vmem>>, vector<8x8x32xf32>
    %112 = vector.shape_cast %111 : vector<8x8x32xf32> to vector<64x32xf32>
    %113 = arith.truncf %112 : vector<64x32xf32> to vector<64x32xbf16>
    %c4_109 = arith.constant 4 : index
    %c0_110 = arith.constant 0 : index
    %c0_111 = arith.constant 0 : index
    %114 = vector.load %arg5[%c4_109, %c0_110, %c0_111] : memref<9x32x64xbf16, #tpu.memory_space<vmem>>, vector<1x32x64xbf16>
    %115 = vector.shape_cast %114 : vector<1x32x64xbf16> to vector<32x64xbf16>
    %cst_112 = arith.constant dense<0.000000e+00> : vector<64x64xf32>
    %116 = tpu.matmul %113, %115, %cst_112 {dimension_numbers = #tpu.dot_dimension_numbers<[1], [0], [0], [1], [0, 0, 1, 1], [], []>} : vector<64x32xbf16>, vector<32x64xbf16>, vector<64x64xf32> -> vector<64x64xf32>
    %117 = arith.addf %110, %116 : vector<64x64xf32>
    %c1_113 = arith.constant 1 : index
    %c2_114 = arith.constant 2 : index
    %c0_115 = arith.constant 0 : index
    %118 = vector.load %arg10[%c1_113, %c2_114, %c0_115] : memref<10x10x32xf32, #tpu.memory_space<vmem>>, vector<8x8x32xf32>
    %119 = vector.shape_cast %118 : vector<8x8x32xf32> to vector<64x32xf32>
    %120 = arith.truncf %119 : vector<64x32xf32> to vector<64x32xbf16>
    %c5_116 = arith.constant 5 : index
    %c0_117 = arith.constant 0 : index
    %c0_118 = arith.constant 0 : index
    %121 = vector.load %arg5[%c5_116, %c0_117, %c0_118] : memref<9x32x64xbf16, #tpu.memory_space<vmem>>, vector<1x32x64xbf16>
    %122 = vector.shape_cast %121 : vector<1x32x64xbf16> to vector<32x64xbf16>
    %cst_119 = arith.constant dense<0.000000e+00> : vector<64x64xf32>
    %123 = tpu.matmul %120, %122, %cst_119 {dimension_numbers = #tpu.dot_dimension_numbers<[1], [0], [0], [1], [0, 0, 1, 1], [], []>} : vector<64x32xbf16>, vector<32x64xbf16>, vector<64x64xf32> -> vector<64x64xf32>
    %124 = arith.addf %117, %123 : vector<64x64xf32>
    %c2_120 = arith.constant 2 : index
    %c0_121 = arith.constant 0 : index
    %c0_122 = arith.constant 0 : index
    %125 = vector.load %arg10[%c2_120, %c0_121, %c0_122] : memref<10x10x32xf32, #tpu.memory_space<vmem>>, vector<8x8x32xf32>
    %126 = vector.shape_cast %125 : vector<8x8x32xf32> to vector<64x32xf32>
    %127 = arith.truncf %126 : vector<64x32xf32> to vector<64x32xbf16>
    %c6_123 = arith.constant 6 : index
    %c0_124 = arith.constant 0 : index
    %c0_125 = arith.constant 0 : index
    %128 = vector.load %arg5[%c6_123, %c0_124, %c0_125] : memref<9x32x64xbf16, #tpu.memory_space<vmem>>, vector<1x32x64xbf16>
    %129 = vector.shape_cast %128 : vector<1x32x64xbf16> to vector<32x64xbf16>
    %cst_126 = arith.constant dense<0.000000e+00> : vector<64x64xf32>
    %130 = tpu.matmul %127, %129, %cst_126 {dimension_numbers = #tpu.dot_dimension_numbers<[1], [0], [0], [1], [0, 0, 1, 1], [], []>} : vector<64x32xbf16>, vector<32x64xbf16>, vector<64x64xf32> -> vector<64x64xf32>
    %131 = arith.addf %124, %130 : vector<64x64xf32>
    %c2_127 = arith.constant 2 : index
    %c1_128 = arith.constant 1 : index
    %c0_129 = arith.constant 0 : index
    %132 = vector.load %arg10[%c2_127, %c1_128, %c0_129] : memref<10x10x32xf32, #tpu.memory_space<vmem>>, vector<8x8x32xf32>
    %133 = vector.shape_cast %132 : vector<8x8x32xf32> to vector<64x32xf32>
    %134 = arith.truncf %133 : vector<64x32xf32> to vector<64x32xbf16>
    %c7_130 = arith.constant 7 : index
    %c0_131 = arith.constant 0 : index
    %c0_132 = arith.constant 0 : index
    %135 = vector.load %arg5[%c7_130, %c0_131, %c0_132] : memref<9x32x64xbf16, #tpu.memory_space<vmem>>, vector<1x32x64xbf16>
    %136 = vector.shape_cast %135 : vector<1x32x64xbf16> to vector<32x64xbf16>
    %cst_133 = arith.constant dense<0.000000e+00> : vector<64x64xf32>
    %137 = tpu.matmul %134, %136, %cst_133 {dimension_numbers = #tpu.dot_dimension_numbers<[1], [0], [0], [1], [0, 0, 1, 1], [], []>} : vector<64x32xbf16>, vector<32x64xbf16>, vector<64x64xf32> -> vector<64x64xf32>
    %138 = arith.addf %131, %137 : vector<64x64xf32>
    %c2_134 = arith.constant 2 : index
    %c2_135 = arith.constant 2 : index
    %c0_136 = arith.constant 0 : index
    %139 = vector.load %arg10[%c2_134, %c2_135, %c0_136] : memref<10x10x32xf32, #tpu.memory_space<vmem>>, vector<8x8x32xf32>
    %140 = vector.shape_cast %139 : vector<8x8x32xf32> to vector<64x32xf32>
    %141 = arith.truncf %140 : vector<64x32xf32> to vector<64x32xbf16>
    %c8_137 = arith.constant 8 : index
    %c0_138 = arith.constant 0 : index
    %c0_139 = arith.constant 0 : index
    %142 = vector.load %arg5[%c8_137, %c0_138, %c0_139] : memref<9x32x64xbf16, #tpu.memory_space<vmem>>, vector<1x32x64xbf16>
    %143 = vector.shape_cast %142 : vector<1x32x64xbf16> to vector<32x64xbf16>
    %cst_140 = arith.constant dense<0.000000e+00> : vector<64x64xf32>
    %144 = tpu.matmul %141, %143, %cst_140 {dimension_numbers = #tpu.dot_dimension_numbers<[1], [0], [0], [1], [0, 0, 1, 1], [], []>} : vector<64x32xbf16>, vector<32x64xbf16>, vector<64x64xf32> -> vector<64x64xf32>
    %145 = arith.addf %138, %144 : vector<64x64xf32>
    %c0_141 = arith.constant 0 : index
    %c0_142 = arith.constant 0 : index
    %146 = vector.load %arg6[%c0_141, %c0_142] : memref<1x64xf32, #tpu.memory_space<vmem>>, vector<1x64xf32>
    %147 = vector.broadcast %146 : vector<1x64xf32> to vector<64x64xf32>
    %148 = arith.mulf %145, %147 : vector<64x64xf32>
    %c0_143 = arith.constant 0 : index
    %c0_144 = arith.constant 0 : index
    %149 = vector.load %arg7[%c0_143, %c0_144] : memref<1x64xf32, #tpu.memory_space<vmem>>, vector<1x64xf32>
    %150 = vector.broadcast %149 : vector<1x64xf32> to vector<64x64xf32>
    %151 = arith.addf %148, %150 : vector<64x64xf32>
    %cst_145 = arith.constant 0.000000e+00 : f32
    %152 = vector.broadcast %cst_145 : f32 to vector<64x64xf32>
    %153 = arith.maximumf %151, %152 : vector<64x64xf32>
    %c0_146 = arith.constant 0 : index
    %c0_147 = arith.constant 0 : index
    %c0_148 = arith.constant 0 : index
    %154 = vector.load %arg8[%c0_146, %c0_147, %c0_148] : memref<1x64x64xf32, #tpu.memory_space<vmem>>, vector<1x64x64xf32>
    %155 = vector.shape_cast %154 : vector<1x64x64xf32> to vector<64x64xf32>
    %156 = vector.shape_cast %153 : vector<64x64xf32> to vector<1x64x64xf32>
    tpu.vector_store %arg8[%c0_146, %c0_147, %c0_148], %156 {strides = array<i32>} : memref<1x64x64xf32, #tpu.memory_space<vmem>>, vector<1x64x64xf32>,
    return
  }
  func.func @transform_0(%arg0: i32) -> (i32, i32, i32, i32) {
    %c0_i32 = arith.constant 0 : i32
    %c0_i32_0 = arith.constant 0 : i32
    %c0_i32_1 = arith.constant 0 : i32
    %c0_i32_2 = arith.constant 0 : i32
    return %arg0, %c0_i32, %c0_i32_0, %c0_i32_1 : i32, i32, i32, i32
  }
  func.func @transform_1(%arg0: i32) -> (i32, i32, i32) {
    %c0_i32 = arith.constant 0 : i32
    %c0_i32_0 = arith.constant 0 : i32
    %c0_i32_1 = arith.constant 0 : i32
    %c0_i32_2 = arith.constant 0 : i32
    return %c0_i32, %c0_i32_0, %c0_i32_1 : i32, i32, i32
  }
  func.func @transform_2(%arg0: i32) -> (i32, i32) {
    %c0_i32 = arith.constant 0 : i32
    %c0_i32_0 = arith.constant 0 : i32
    %c0_i32_1 = arith.constant 0 : i32
    return %c0_i32, %c0_i32_0 : i32, i32
  }
  func.func @transform_3(%arg0: i32) -> (i32, i32) {
    %c0_i32 = arith.constant 0 : i32
    %c0_i32_0 = arith.constant 0 : i32
    %c0_i32_1 = arith.constant 0 : i32
    return %c0_i32, %c0_i32_0 : i32, i32
  }
  func.func @transform_4(%arg0: i32) -> (i32, i32, i32) {
    %c0_i32 = arith.constant 0 : i32
    %c0_i32_0 = arith.constant 0 : i32
    %c0_i32_1 = arith.constant 0 : i32
    %c0_i32_2 = arith.constant 0 : i32
    return %c0_i32, %c0_i32_0, %c0_i32_1 : i32, i32, i32
  }
  func.func @transform_5(%arg0: i32) -> (i32, i32) {
    %c0_i32 = arith.constant 0 : i32
    %c0_i32_0 = arith.constant 0 : i32
    %c0_i32_1 = arith.constant 0 : i32
    return %c0_i32, %c0_i32_0 : i32, i32
  }
  func.func @transform_6(%arg0: i32) -> (i32, i32) {
    %c0_i32 = arith.constant 0 : i32
    %c0_i32_0 = arith.constant 0 : i32
    %c0_i32_1 = arith.constant 0 : i32
    return %c0_i32, %c0_i32_0 : i32, i32
  }
  func.func @transform_7(%arg0: i32) -> (i32, i32, i32) {
    %c0_i32 = arith.constant 0 : i32
    %c0_i32_0 = arith.constant 0 : i32
    %c0_i32_1 = arith.constant 0 : i32
    return %arg0, %c0_i32, %c0_i32_0 : i32, i32, i32
  }
}

</mosaic_0001>

<bundles_post_ra>
// kernel: tile.38
= control target key start
LH: loop header
LB: loop body
LE: loop exit
PB: predicated region body
PF: predicated region fallthrough
CT: control target
= control target key end

     0   :  { %s22_s0 = inlined_call_operand.vmem [shape: f32[8], index: 0, kind: input, shape index: {}]   ;;  %s23_s1 = inlined_call_operand.vmem [shape: f32[8,8], index: 1, kind: output, shape index: {}]  }
   0x1   :  { %v4_v0 = vld [vmem:[%s22_s0] ss:$0 sm:$0xff] }
   0x2   :  { %5 = vst [vmem:[%s23_s1] sm:$0xff] %v4_v0 }

// kernel: tile.28
= control target key start
LH: loop header
LB: loop body
LE: loop exit
PB: predicated region body
PF: predicated region fallthrough
CT: control target
= control target key end

     0   :  { %s22_s0 = inlined_call_operand.vmem [shape: f32[4], index: 0, kind: input, shape index: {}]   ;;  %s23_s1 = inlined_call_operand.vmem [shape: f32[8,4], index: 1, kind: output, shape index: {}]  }
   0x1   :  { %v4_v0 = vld [vmem:[%s22_s0] ss:$0 sm:$0xff] }
   0x2   :  { %5 = vst [vmem:[%s23_s1] sm:$0xff] %v4_v0 }

// kernel: tile.29
= control target key start
LH: loop header
LB: loop body
LE: loop exit
PB: predicated region body
PF: predicated region fallthrough
CT: control target
= control target key end

     0   :  { %s67_s10 = smov 28   ;;  %s68_s11 = smov 20   ;;  %vm3_vm0 = vcmask 31744   ;;  %vm9_vm1 = vcmask 261344   ;;  %vm15_vm2 = vcmask 228544   ;;  %vm21_vm3 = vcmask 195744   ;;  %s111_s0 = inlined_call_operand.vmem [shape: f32[8,4], index: 0, kind: input, shape index: {}]   ;;  %s112_s1 = inlined_call_operand.vmem [shape: f32[1,32], index: 1, kind: output, shape index: {}]  }
   0x1   :  { %v53_v0 = vld [vmem:[%s111_s0 + $0x7] sm:$0x1]   ;;  %v55_v1 = vld [vmem:[%s111_s0 + $0x5] sm:$0x1]   ;;  %v54_v2 = vld [vmem:[%s111_s0 + $0x6] sm:$0x1]  }
   0x2   :  { %7 = vrot.lane.b32.xlu0 %v53_v0, %s67_s10  ;;  %19 = vrot.lane.b32.xlu1 %v55_v1, %s68_s11  ;;  %v56_v3 = vld [vmem:[%s111_s0 + $0x4] sm:$0x1]   ;;  %v2_v4 = vld [vmem:[%s111_s0] sm:$0x1]   ;;  %s69_s18 = smov 24   ;;  %s70_s19 = smov 16  }
   0x3   :  { %4 = vst.msk [vmem:[#allocation0] sm:$0x1] %vm3_vm0, %v2_v4   ;;  %v57_v5 = vld [vmem:[%s111_s0 + $0x3] sm:$0x1]   ;;  %v58_v6 = vld [vmem:[%s111_s0 + $0x2] sm:$0x1]  }
   0x4   :  { %s71_s24 = smov 12   ;;  %s72_s25 = smov 8   ;;  %v59_v7 = vld [vmem:[%s111_s0 + $0x1] sm:$0x1]   ;;  %vm27_vm4 = vcmask 162944   ;;  %vm33_vm5 = vcmask 130144  }
   0x5   :  { %s73_s0 = smov 4   ;;  %vm39_vm6 = vcmask 97344   ;;  %vm45_vm7 = vcmask 64544  }
   0x6   :  { %13 = vrot.lane.b32.xlu0 %v54_v2, %s69_s18  ;;  %25 = vrot.lane.b32.xlu1 %v56_v3, %s70_s19 }
   0xa   :  { %31 = vrot.lane.b32.xlu0 %v57_v5, %s71_s24  ;;  %37 = vrot.lane.b32.xlu1 %v58_v6, %s72_s25 }
   0xe   :  { %43 = vrot.lane.b32.xlu0 %v59_v7, %s73_s0 }
  0x74   :  { %v8_v8 = vpop.permute.xlu0 %7   ;;  %v20_v9 = vpop.permute.xlu1 %19  }
  0x75   :  { %10 = vst.msk [vmem:[#allocation0] sm:$0x1] %vm9_vm1, %v8_v8  }
  0x78   :  { %v14_v10 = vpop.permute.xlu0 %13   ;;  %v26_v11 = vpop.permute.xlu1 %25  }
  0x79   :  { %16 = vst.msk [vmem:[#allocation0] sm:$0x1] %vm15_vm2, %v14_v10  }
  0x7a   :  { %22 = vst.msk [vmem:[#allocation0] sm:$0x1] %vm21_vm3, %v20_v9  }
  0x7b   :  { %28 = vst.msk [vmem:[#allocation0] sm:$0x1] %vm27_vm4, %v26_v11  }
  0x7c   :  { %v32_v12 = vpop.permute.xlu0 %31   ;;  %v38_v13 = vpop.permute.xlu1 %37  }
  0x7d   :  { %34 = vst.msk [vmem:[#allocation0] sm:$0x1] %vm33_vm5, %v32_v12  }
  0x7e   :  { %40 = vst.msk [vmem:[#allocation0] sm:$0x1] %vm39_vm6, %v38_v13  }
  0x80   :  { %v44_v14 = vpop.permute.xlu0 %43  }
  0x81   :  { %46 = vst.msk [vmem:[#allocation0] sm:$0x1] %vm45_vm7, %v44_v14  }
  0x88   :  { %v50_v15 = vld [vmem:[#allocation0] sm:$0x1] }
  0x89   :  { %52 = vst [vmem:[%s112_s1] sm:$0x1] %v50_v15 }

// kernel: tile.39
= control target key start
LH: loop header
LB: loop body
LE: loop exit
PB: predicated region body
PF: predicated region fallthrough
CT: control target
= control target key end

     0   :  { %s67_s10 = smov 56   ;;  %s68_s11 = smov 40   ;;  %vm3_vm0 = vcmask 64512   ;;  %vm9_vm1 = vcmask 523712   ;;  %vm15_vm2 = vcmask 458112   ;;  %vm21_vm3 = vcmask 392512   ;;  %s111_s0 = inlined_call_operand.vmem [shape: f32[8,8], index: 0, kind: input, shape index: {}]   ;;  %s112_s1 = inlined_call_operand.vmem [shape: f32[1,64], index: 1, kind: output, shape index: {}]  }
   0x1   :  { %v53_v0 = vld [vmem:[%s111_s0 + $0x7] sm:$0x1]   ;;  %v55_v1 = vld [vmem:[%s111_s0 + $0x5] sm:$0x1]   ;;  %v54_v2 = vld [vmem:[%s111_s0 + $0x6] sm:$0x1]  }
   0x2   :  { %7 = vrot.lane.b32.xlu0 %v53_v0, %s67_s10  ;;  %19 = vrot.lane.b32.xlu1 %v55_v1, %s68_s11  ;;  %v56_v3 = vld [vmem:[%s111_s0 + $0x4] sm:$0x1]   ;;  %v2_v4 = vld [vmem:[%s111_s0] sm:$0x1]   ;;  %s69_s18 = smov 48   ;;  %s70_s19 = smov 32  }
   0x3   :  { %4 = vst.msk [vmem:[#allocation0] sm:$0x1] %vm3_vm0, %v2_v4   ;;  %v57_v5 = vld [vmem:[%s111_s0 + $0x3] sm:$0x1]   ;;  %v58_v6 = vld [vmem:[%s111_s0 + $0x2] sm:$0x1]  }
   0x4   :  { %s71_s24 = smov 24   ;;  %s72_s25 = smov 16   ;;  %v59_v7 = vld [vmem:[%s111_s0 + $0x1] sm:$0x1]   ;;  %vm27_vm4 = vcmask 326912   ;;  %vm33_vm5 = vcmask 261312  }
   0x5   :  { %s73_s0 = smov 8   ;;  %vm39_vm6 = vcmask 195712   ;;  %vm45_vm7 = vcmask 130112  }
   0x6   :  { %13 = vrot.lane.b32.xlu0 %v54_v2, %s69_s18  ;;  %25 = vrot.lane.b32.xlu1 %v56_v3, %s70_s19 }
   0xa   :  { %31 = vrot.lane.b32.xlu0 %v57_v5, %s71_s24  ;;  %37 = vrot.lane.b32.xlu1 %v58_v6, %s72_s25 }
   0xe   :  { %43 = vrot.lane.b32.xlu0 %v59_v7, %s73_s0 }
  0x74   :  { %v8_v8 = vpop.permute.xlu0 %7   ;;  %v20_v9 = vpop.permute.xlu1 %19  }
  0x75   :  { %10 = vst.msk [vmem:[#allocation0] sm:$0x1] %vm9_vm1, %v8_v8  }
  0x78   :  { %v14_v10 = vpop.permute.xlu0 %13   ;;  %v26_v11 = vpop.permute.xlu1 %25  }
  0x79   :  { %16 = vst.msk [vmem:[#allocation0] sm:$0x1] %vm15_vm2, %v14_v10  }
  0x7a   :  { %22 = vst.msk [vmem:[#allocation0] sm:$0x1] %vm21_vm3, %v20_v9  }
  0x7b   :  { %28 = vst.msk [vmem:[#allocation0] sm:$0x1] %vm27_vm4, %v26_v11  }
  0x7c   :  { %v32_v12 = vpop.permute.xlu0 %31   ;;  %v38_v13 = vpop.permute.xlu1 %37  }
  0x7d   :  { %34 = vst.msk [vmem:[#allocation0] sm:$0x1] %vm33_vm5, %v32_v12  }
  0x7e   :  { %40 = vst.msk [vmem:[#allocation0] sm:$0x1] %vm39_vm6, %v38_v13  }
  0x80   :  { %v44_v14 = vpop.permute.xlu0 %43  }
  0x81   :  { %46 = vst.msk [vmem:[#allocation0] sm:$0x1] %vm45_vm7, %v44_v14  }
  0x88   :  { %v50_v15 = vld [vmem:[#allocation0] sm:$0x1] }
  0x89   :  { %52 = vst [vmem:[%s112_s1] sm:$0x1] %v50_v15 }

// kernel: pub_forward.1
= control target key start
LH: loop header
LB: loop body
LE: loop exit
PB: predicated region body
PF: predicated region fallthrough
CT: control target
= control target key end

     0   :  { %s3270_s24 = smov 0   ;;  %s3685_s0 = inlined_call_operand.vmem [shape: bf16[2,8,8,32], index: 0, kind: input, shape index: {}]   ;;  %s3686_s1 = inlined_call_operand.vmem [shape: bf16[9,32,32], index: 1, kind: input, shape index: {}]   ;;  %s3687_s2 = inlined_call_operand.vmem [shape: f32[1,32], index: 2, kind: input, shape index: {}]   ;;  %s3688_s3 = inlined_call_operand.vmem [shape: f32[1,32], index: 3, kind: input, shape index: {}]   ;;  %s3689_s4 = inlined_call_operand.vmem [shape: bf16[9,32,64], index: 4, kind: input, shape index: {}]   ;;  %s3690_s5 = inlined_call_operand.vmem [shape: f32[1,64], index: 5, kind: input, shape index: {}]   ;;  %s3691_s6 = inlined_call_operand.vmem [shape: f32[1,64], index: 6, kind: input, shape index: {}]   ;;  %s3692_s7 = inlined_call_operand.vmem [shape: f32[2,64,64], index: 7, kind: output, shape index: {}]  }
   0x1 LB: > { %s2516_s25 = sadd.s32 4294967295, %s3227_s24   ;;  %p2520_p0 = scmp.ge.s32.totalorder %s3227_s24, 1  ;;  %s3227_s24 = sphi %s3270_s24, %s17_s24  }
   0x2   : > { %p237_p1 = scmp.lt.s32.totalorder %s3227_s24, 3 }
   0x4   : > { %p238_p2 = pnand %p2520_p0, %p237_p1 }
   0x5   : > { %v3185_v0 = vld [vmem:[%s3686_s1 + $0x10] sm:$0xff] (!%p238_p2)   ;;  %p269_p3 = scmp.lt.s32.totalorder (!%p238_p2), %s2516_s25, 1  ;;  %v3186_v1 = vld [vmem:[%s3686_s1 + $0x18] sm:$0xff] (!%p238_p2)   ;;  %vm280_vm0 = vcmask (!%p238_p2), 261120   ;;  %vm282_vm1 = vcmask (!%p238_p2), 254976   ;;  %v3229_v2 = vmov (!%p238_p2), 0.0  }
   0x6   : > { %241 = sbr.rel (%p238_p2) target bundleno = 754 (0x2f2), region = 48  ;;  %2832 = vmatprep.subr.bf16.mxu0 (!%p238_p2), %v3185_v0  ;;  %281 = vst.msk [vmem:[#allocation2] sm:$0xff] (!%p238_p2), %vm280_vm0, %v3229_v2  ;;  %284 = vst.msk [vmem:[#allocation2 + $0x10] sm:$0xff] (!%p238_p2), %vm280_vm0, %v3229_v2  ;;  %v3187_v3 = vld [vmem:[%s3686_s1] sm:$0xff] (!%p238_p2)   ;;  %v3188_v25 = vld [vmem:[%s3686_s1 + $0x8] sm:$0xff] (!%p238_p2)   ;;  %vm2452_vm2 = vcmask (!%p238_p2), 523264  }
   0x7   : > { %2833 = vmatpush3.bf16.msra.mxu0 (!%p238_p2), %v3185_v0  ;;  %283 = vst.msk [vmem:[#allocation2 + $0x8] sm:$0x3] (!%p238_p2), %vm282_vm1, %v3229_v2  ;;  %285 = vst.msk [vmem:[#allocation2 + $0x18] sm:$0x3] (!%p238_p2), %vm282_vm1, %v3229_v2  ;;  %v3189_v30 = vld [vmem:[%s3686_s1 + $0x20] sm:$0xff] (!%p238_p2)   ;;  %v3190_v38 = vld [vmem:[%s3686_s1 + $0x28] sm:$0xff] (!%p238_p2)  }
   0x8   : > { %286 = vst.msk [vmem:[#allocation2 + $0x20] sm:$0xff] (!%p238_p2), %vm280_vm0, %v3229_v2  ;;  %288 = vst.msk [vmem:[#allocation2 + $0x30] sm:$0xff] (!%p238_p2), %vm280_vm0, %v3229_v2  ;;  %2834 = vmatprep.subr.bf16.mxu0 (!%p238_p2), %v3186_v1  ;;  %v3191_v44 = vld [vmem:[%s3686_s1 + $0x30] sm:$0xff] (!%p238_p2)   ;;  %v3192_v53 = vld [vmem:[%s3686_s1 + $0x38] sm:$0xff] (!%p238_p2)  }
   0x9   : > { %287 = vst.msk [vmem:[#allocation2 + $0x28] sm:$0x3] (!%p238_p2), %vm282_vm1, %v3229_v2  ;;  %289 = vst.msk [vmem:[#allocation2 + $0x38] sm:$0x3] (!%p238_p2), %vm282_vm1, %v3229_v2  ;;  %v3193_v56 = vld [vmem:[%s3686_s1 + $0x40] sm:$0xff] (!%p238_p2)   ;;  %v3194_v61 = vld [vmem:[%s3686_s1 + $0x48] sm:$0xff] (!%p238_p2)  }
   0xa   : > { %290 = vst.msk [vmem:[#allocation2 + $0x40] sm:$0xff] (!%p238_p2), %vm280_vm0, %v3229_v2  ;;  %292 = vst.msk [vmem:[#allocation2 + $0x50] sm:$0xff] (!%p238_p2), %vm280_vm0, %v3229_v2  ;;  %v3195_v63 = vld [vmem:[%s3686_s1 + $0x50] sm:$0xff] (!%p238_p2)  }
   0xb   : > { %291 = vst.msk [vmem:[#allocation2 + $0x48] sm:$0x3] (!%p238_p2), %vm282_vm1, %v3229_v2  ;;  %293 = vst.msk [vmem:[#allocation2 + $0x58] sm:$0x3] (!%p238_p2), %vm282_vm1, %v3229_v2  ;;  %2835 = vmatpush3.bf16.msra.mxu0 (!%p238_p2), %v3186_v1 }
   0xc   : > { %294 = vst.msk [vmem:[#allocation2 + $0x60] sm:$0xff] (!%p238_p2), %vm280_vm0, %v3229_v2  ;;  %296 = vst.msk [vmem:[#allocation2 + $0x70] sm:$0xff] (!%p238_p2), %vm280_vm0, %v3229_v2  ;;  %2844 = vmatprep.subr.bf16.mxu0 (!%p238_p2), %v3187_v3 }
   0xd   : > { %s3694_s25 = smov (!%p269_p3, %s2516_s25), 1  ;;  %295 = vst.msk [vmem:[#allocation2 + $0x68] sm:$0x3] %vm282_vm1, %v3229_v2  ;;  %297 = vst.msk [vmem:[#allocation2 + $0x78] sm:$0x3] %vm282_vm1, %v3229_v2  ;;  %v327_v28 = vld [vmem:[#allocation2] sm:$0xff] }
   0xe   : > { %298 = vst.msk [vmem:[#allocation2 + $0x80] sm:$0xff] %vm280_vm0, %v3229_v2  ;;  %300 = vst.msk [vmem:[#allocation2 + $0x90] sm:$0xff] %vm280_vm0, %v3229_v2  ;;  %s2703_s30 = sshll.u32 %s3694_s25, 5  ;;  %v343_v16 = vld [vmem:[#allocation2 + $0x1] sm:$0xff]  ;;  %s2704_s26 = sshll.u32 %s3694_s25, 6 }
   0xf   : > { %299 = vst.msk [vmem:[#allocation2 + $0x88] sm:$0x3] %vm282_vm1, %v3229_v2  ;;  %301 = vst.msk [vmem:[#allocation2 + $0x98] sm:$0x3] %vm282_vm1, %v3229_v2  ;;  %s273_s12 = scalar_lea.vmem %s3685_s0, %s2703_s30  ;;  %v538_v42 = vld [vmem:[#allocation2 + $0x2] sm:$0xff]  ;;  %s3664_s29 = scalar_lea.vmem %s3692_s7, %s2704_s26 }
  0x10   : > { %1375 = vst.msk [vmem:[#allocation3] sm:$0xff] %vm280_vm0, %v3229_v2  ;;  %1377 = vst.msk [vmem:[#allocation3 + $0x10] sm:$0xff] %vm280_vm0, %v3229_v2  ;;  %v2706_v4 = vld [vmem:[%s273_s12] sm:$0xff]   ;;  %v2721_v5 = vld [vmem:[%s273_s12 + $0x8] sm:$0xff]  }
  0x11   : > { %1376 = vst.msk [vmem:[#allocation3 + $0x8] sm:$0x3] %vm282_vm1, %v3229_v2  ;;  %1378 = vst.msk [vmem:[#allocation3 + $0x18] sm:$0x3] %vm282_vm1, %v3229_v2  ;;  %v2722_v6 = vld [vmem:[%s273_s12 + $0x10] sm:$0xff]   ;;  %v2707_v7 = vunpack.c.l.bf16 %v2706_v4  ;;  %v2708_v8 = vunpack.c.h.bf16 %v2706_v4  ;;  %v2711_v9 = vunpack.c.l.bf16 %v2721_v5  ;;  %v2712_v10 = vunpack.c.h.bf16 %v2721_v5  ;;  %v2723_v11 = vld [vmem:[%s273_s12 + $0x18] sm:$0xff]  }
  0x12   : > { %1379 = vst.msk [vmem:[#allocation3 + $0x20] sm:$0xff] %vm280_vm0, %v3229_v2  ;;  %1381 = vst.msk [vmem:[#allocation3 + $0x30] sm:$0xff] %vm280_vm0, %v3229_v2  ;;  %v2715_v12 = vunpack.c.l.bf16 %v2722_v6  ;;  %v2716_v13 = vunpack.c.h.bf16 %v2722_v6  ;;  %v2719_v14 = vunpack.c.l.bf16 %v2723_v11  ;;  %v2720_v15 = vunpack.c.h.bf16 %v2723_v11  ;;  %v3196_v4 = vld [vmem:[%s3686_s1 + $0x58] sm:$0xff]   ;;  %v3197_v6 = vld [vmem:[%s3686_s1 + $0x60] sm:$0xff]  }
  0x13   : > { %1380 = vst.msk [vmem:[#allocation3 + $0x28] sm:$0x3] %vm282_vm1, %v3229_v2  ;;  %1382 = vst.msk [vmem:[#allocation3 + $0x38] sm:$0x3] %vm282_vm1, %v3229_v2  ;;  %v3198_v11 = vld [vmem:[%s3686_s1 + $0x68] sm:$0xff]  }
  0x14   : > { %1383 = vst.msk [vmem:[#allocation3 + $0x40] sm:$0xff] %vm280_vm0, %v3229_v2  ;;  %1385 = vst.msk [vmem:[#allocation3 + $0x50] sm:$0xff] %vm280_vm0, %v3229_v2 }
  0x15   : > { %1384 = vst.msk [vmem:[#allocation3 + $0x48] sm:$0x3] %vm282_vm1, %v3229_v2  ;;  %1386 = vst.msk [vmem:[#allocation3 + $0x58] sm:$0x3] %vm282_vm1, %v3229_v2 }
  0x16   : > { %1387 = vst.msk [vmem:[#allocation3 + $0x60] sm:$0xff] %vm280_vm0, %v3229_v2  ;;  %1389 = vst.msk [vmem:[#allocation3 + $0x70] sm:$0xff] %vm280_vm0, %v3229_v2 }
  0x17   : > { %1388 = vst.msk [vmem:[#allocation3 + $0x68] sm:$0x3] %vm282_vm1, %v3229_v2  ;;  %1390 = vst.msk [vmem:[#allocation3 + $0x78] sm:$0x3] %vm282_vm1, %v3229_v2 }
  0x18   : > { %1391 = vst.msk [vmem:[#allocation3 + $0x80] sm:$0xff] %vm280_vm0, %v3229_v2  ;;  %1393 = vst.msk [vmem:[#allocation3 + $0x90] sm:$0xff] %vm280_vm0, %v3229_v2 }
  0x19   : > { %1392 = vst.msk [vmem:[#allocation3 + $0x88] sm:$0x3] %vm282_vm1, %v3229_v2  ;;  %1394 = vst.msk [vmem:[#allocation3 + $0x98] sm:$0x3] %vm282_vm1, %v3229_v2 }
  0x1a   : > { %319 = vst.msk [vmem:[#allocation2 + $0x11] sm:$0xff] %vm280_vm0, %v2707_v7  ;;  %320 = vst.msk [vmem:[#allocation2 + $0x21] sm:$0xff] %vm280_vm0, %v2708_v8 }
  0x1b   : > { %321 = vst.msk [vmem:[#allocation2 + $0x31] sm:$0xff] %vm280_vm0, %v2711_v9  ;;  %322 = vst.msk [vmem:[#allocation2 + $0x41] sm:$0xff] %vm280_vm0, %v2712_v10 }
  0x1c   : > { %323 = vst.msk [vmem:[#allocation2 + $0x51] sm:$0xff] %vm280_vm0, %v2715_v12  ;;  %324 = vst.msk [vmem:[#allocation2 + $0x61] sm:$0xff] %vm280_vm0, %v2716_v13  ;;  %v3199_v13 = vld [vmem:[%s3686_s1 + $0x70] sm:$0xff]  }
  0x1d   : > { %325 = vst.msk [vmem:[#allocation2 + $0x71] sm:$0xff] %vm280_vm0, %v2719_v14  ;;  %326 = vst.msk [vmem:[#allocation2 + $0x81] sm:$0xff] %vm280_vm0, %v2720_v15  ;;  %v3200_v15 = vld [vmem:[%s3686_s1 + $0x78] sm:$0xff]  }
  0x21   : > { %v3341_v17 = vld [vmem:[#allocation2 + $0x11] sm:$0xff]  ;;  %v3343_v18 = vld [vmem:[#allocation2 + $0x21] sm:$0xff] }
  0x22   : > { %v3345_v19 = vld [vmem:[#allocation2 + $0x31] sm:$0xff]  ;;  %v351_v20 = vpack.c.bf16 %v3341_v17, %v343_v16  ;;  %v3352_v22 = vld [vmem:[#allocation2 + $0x41] sm:$0xff]  ;;  %v774_v1 = vpack.c.bf16 %v3343_v18, %v3341_v17 }
  0x23   : > { %v3350_v21 = vpack.c.bf16 %v3345_v19, %v3343_v18  ;;  %v3354_v23 = vld [vmem:[#allocation2 + $0x51] sm:$0xff]  ;;  %v3368_v26 = vld [vmem:[#allocation2 + $0x61] sm:$0xff]  ;;  %v775_v2 = vpack.c.bf16 %v3352_v22, %v3345_v19 }
  0x24   : > { %v3358_v24 = vpack.c.bf16 %v3354_v23, %v3352_v22  ;;  %2836 = vmatprep.mubr.msk.bf16.mxu0 %vm280_vm0, %v351_v20  ;;  %v3370_v27 = vld [vmem:[#allocation2 + $0x71] sm:$0xff]  ;;  %v329_v33 = vld [vmem:[#allocation2 + $0x20] sm:$0xff]  ;;  %v3202_v19 = vld [vmem:[%s3686_s1 + $0x88] sm:$0xff]  }
  0x25   : > { %2837 = vmatmul.mubr.msk.bf16.vlgmr.msra.gmra.mrb[0].mxu0 %vm280_vm0, %v3350_v21  ;;  %v328_v29 = vld [vmem:[#allocation2 + $0x10] sm:$0xff]  ;;  %v3377_v31 = vpack.c.bf16 %v3370_v27, %v3368_v26  ;;  %v331_v35 = vld [vmem:[#allocation2 + $0x40] sm:$0xff] }
  0x26   : > { %2845 = vmatpush3.bf16.msra.mxu0 %v3187_v3  ;;  %2840 = vmatprep.mubr.msk.bf16.mxu0 %vm280_vm0, %v3358_v24  ;;  %v335_v32 = vpack.c.bf16 %v328_v29, %v327_v28  ;;  %v330_v34 = vld [vmem:[#allocation2 + $0x30] sm:$0xff]  ;;  %v333_v40 = vld [vmem:[#allocation2 + $0x60] sm:$0xff]  ;;  %v660_v58 = vpack.c.bf16 %v329_v33, %v328_v29  ;;  %v776_v3 = vpack.c.bf16 %v3368_v26, %v3354_v23 }
  0x27   : > { %2846 = vmatprep.subr.bf16.mxu0 %v3188_v25  ;;  %v332_v36 = vld [vmem:[#allocation2 + $0x50] sm:$0xff]  ;;  %v3382_v37 = vpack.c.bf16 %v330_v34, %v329_v33  ;;  %v540_v47 = vld [vmem:[#allocation2 + $0x22] sm:$0xff]  ;;  %v661_v59 = vpack.c.bf16 %v331_v35, %v330_v34  ;;  %v2612_v29 = vld [vmem:[%s3688_s3] ss:$0 sm:$0xff] }
  0x28   : > { %v3387_v39 = vpack.c.bf16 %v332_v36, %v331_v35  ;;  %v334_v41 = vld [vmem:[#allocation2 + $0x70] sm:$0xff]  ;;  %v542_v49 = vld [vmem:[#allocation2 + $0x42] sm:$0xff]  ;;  %v662_v60 = vpack.c.bf16 %v333_v40, %v332_v36 }
  0x29   : > { %v539_v43 = vld [vmem:[#allocation2 + $0x12] sm:$0xff]  ;;  %v3396_v45 = vpack.c.bf16 %v334_v41, %v333_v40  ;;  %v544_v54 = vld [vmem:[#allocation2 + $0x62] sm:$0xff] }
  0x2a   : > { %2847 = vmatpush3.bf16.msra.mxu0 %v3188_v25  ;;  %v546_v46 = vpack.c.bf16 %v539_v43, %v538_v42  ;;  %v541_v48 = vld [vmem:[#allocation2 + $0x32] sm:$0xff]  ;;  %v659_v62 = vld [vmem:[#allocation2 + $0x80] sm:$0xff]  ;;  %v888_v8 = vpack.c.bf16 %v540_v47, %v539_v43 }
  0x2b   : > { %2856 = vmatprep.subr.bf16.mxu0 %v3189_v30  ;;  %v543_v50 = vld [vmem:[#allocation2 + $0x52] sm:$0xff]  ;;  %v3401_v51 = vpack.c.bf16 %v541_v48, %v540_v47  ;;  %v663_v0 = vpack.c.bf16 %v659_v62, %v334_v41  ;;  %v773_v5 = vld [vmem:[#allocation2 + $0x81] sm:$0xff]  ;;  %v889_v9 = vpack.c.bf16 %v542_v49, %v541_v48 }
  0x2c   : > { %v3403_v52 = vpack.c.bf16 %v543_v50, %v542_v49  ;;  %v545_v55 = vld [vmem:[#allocation2 + $0x72] sm:$0xff]  ;;  %v777_v7 = vpack.c.bf16 %v773_v5, %v3370_v27  ;;  %v890_v10 = vpack.c.bf16 %v544_v54, %v543_v50  ;;  %v887_v12 = vld [vmem:[#allocation2 + $0x82] sm:$0xff]  ;;  %v2611_v27 = vld [vmem:[%s3687_s2] ss:$0 sm:$0xff] }
  0x2d   : > { %2841 = vmatmul.mubr.msk.bf16.gmra.mrb[4].mxu0 %vm280_vm0, %v3377_v31  ;;  %v3415_v57 = vpack.c.bf16 %v545_v55, %v544_v54  ;;  %v891_v14 = vpack.c.bf16 %v887_v12, %v545_v55  ;;  %v1002_v16 = vld [vmem:[#allocation2 + $0x90] sm:$0xff]  ;;  %v3201_v17 = vld [vmem:[%s3686_s1 + $0x80] sm:$0xff]   ;;  %v3204_v25 = vld [vmem:[%s3689_s4 + $0x18] sm:$0xff]  }
  0x2e   : > { %2848 = vmatprep.mubr.msk.bf16.mxu0 %vm280_vm0, %v335_v32  ;;  %v1006_v18 = vpack.c.bf16 %v1002_v16, %v659_v62  ;;  %v1116_v20 = vld [vmem:[#allocation2 + $0x91] sm:$0xff]  ;;  %v3205_v26 = vld [vmem:[%s3689_s4] sm:$0xff]  }
  0x2f   : > { %v1120_v22 = vpack.c.bf16 %v1116_v20, %v773_v5 }
  0x35   : > { %2849 = vmatmul.mubr.msk.bf16.vlgmr.msra.gmra.mrb[0].mxu0 %vm280_vm0, %v3382_v37 }
  0x36   : > { %2857 = vmatpush3.bf16.msra.mxu0 %v3189_v30  ;;  %2852 = vmatprep.mubr.msk.bf16.mxu0 %vm280_vm0, %v3387_v39 }
  0x37   : > { %2858 = vmatprep.subr.bf16.mxu0 %v3190_v38 }
  0x3a   : > { %2859 = vmatpush3.bf16.msra.mxu0 %v3190_v38 }
  0x3b   : > { %2868 = vmatprep.subr.bf16.mxu0 %v3191_v44 }
  0x3d   : > { %2853 = vmatmul.mubr.msk.bf16.gmra.mrb[4].mxu0 %vm280_vm0, %v3396_v45 }
  0x3e   : > { %2860 = vmatprep.mubr.msk.bf16.mxu0 %vm280_vm0, %v546_v46 }
  0x45   : > { %2861 = vmatmul.mubr.msk.bf16.vlgmr.msra.gmra.mrb[0].mxu0 %vm280_vm0, %v3401_v51 }
  0x46   : > { %2869 = vmatpush3.bf16.msra.mxu0 %v3191_v44  ;;  %2864 = vmatprep.mubr.msk.bf16.mxu0 %vm280_vm0, %v3403_v52 }
  0x47   : > { %2870 = vmatprep.subr.bf16.mxu0 %v3192_v53 }
  0x4a   : > { %2871 = vmatpush3.bf16.msra.mxu0 %v3192_v53 }
  0x4b   : > { %2880 = vmatprep.subr.bf16.mxu0 %v3193_v56 }
  0x4d   : > { %2865 = vmatmul.mubr.msk.bf16.gmra.mrb[4].mxu0 %vm280_vm0, %v3415_v57 }
  0x4e   : > { %2872 = vmatprep.mubr.msk.bf16.mxu0 %vm280_vm0, %v660_v58 }
  0x55   : > { %2873 = vmatmul.mubr.msk.bf16.vlgmr.msra.gmra.mrb[0].mxu0 %vm280_vm0, %v661_v59 }
  0x56   : > { %2881 = vmatpush3.bf16.msra.mxu0 %v3193_v56  ;;  %2876 = vmatprep.mubr.msk.bf16.mxu0 %vm280_vm0, %v662_v60 }
  0x57   : > { %2882 = vmatprep.subr.bf16.mxu0 %v3194_v61 }
  0x5a   : > { %2883 = vmatpush3.bf16.msra.mxu0 %v3194_v61 }
  0x5b   : > { %2892 = vmatprep.subr.bf16.mxu0 %v3195_v63 }
  0x5d   : > { %2877 = vmatmul.mubr.msk.bf16.gmra.mrb[4].mxu0 %vm280_vm0, %v663_v0 }
  0x5e   : > { %2884 = vmatprep.mubr.msk.bf16.mxu0 %vm280_vm0, %v774_v1 }
  0x65   : > { %2885 = vmatmul.mubr.msk.bf16.vlgmr.msra.gmra.mrb[0].mxu0 %vm280_vm0, %v775_v2 }
  0x66   : > { %2893 = vmatpush3.bf16.msra.mxu0 %v3195_v63  ;;  %2888 = vmatprep.mubr.msk.bf16.mxu0 %vm280_vm0, %v776_v3  ;;  %v3206_v3 = vld [vmem:[%s3689_s4 + $0x8] sm:$0xff]  }
  0x67   : > { %2894 = vmatprep.subr.bf16.mxu0 %v3196_v4 }
  0x6a   : > { %2895 = vmatpush3.bf16.msra.mxu0 %v3196_v4  ;;  %v3207_v4 = vld [vmem:[%s3689_s4 + $0x20] sm:$0xff]  }
  0x6b   : > { %2904 = vmatprep.subr.bf16.mxu0 %v3197_v6 }
  0x6d   : > { %2889 = vmatmul.mubr.msk.bf16.gmra.mrb[4].mxu0 %vm280_vm0, %v777_v7 }
  0x6e   : > { %2896 = vmatprep.mubr.msk.bf16.mxu0 %vm280_vm0, %v888_v8  ;;  %v1404_v8 = vld [vmem:[#allocation3] sm:$0xff] }
  0x75   : > { %2897 = vmatmul.mubr.msk.bf16.vlgmr.msra.gmra.mrb[0].mxu0 %vm280_vm0, %v889_v9 }
  0x76   : > { %2905 = vmatpush3.bf16.msra.mxu0 %v3197_v6  ;;  %2900 = vmatprep.mubr.msk.bf16.mxu0 %vm280_vm0, %v890_v10 }
  0x77   : > { %2906 = vmatprep.subr.bf16.mxu0 %v3198_v11 }
  0x7a   : > { %2907 = vmatpush3.bf16.msra.mxu0 %v3198_v11 }
  0x7b   : > { %2916 = vmatprep.subr.bf16.mxu0 %v3199_v13 }
  0x7d   : > { %2901 = vmatmul.mubr.msk.bf16.gmra.mrb[4].mxu0 %vm280_vm0, %v891_v14 }
  0x7e   : > { %2908 = vmatprep.mubr.msk.bf16.mxu0 %vm280_vm0, %v3382_v37 }
  0x85   : > { %2909 = vmatmul.mubr.msk.bf16.vlgmr.msra.gmra.mrb[0].mxu0 %vm280_vm0, %v3387_v39 }
  0x86   : > { %2917 = vmatpush3.bf16.msra.mxu0 %v3199_v13  ;;  %2912 = vmatprep.mubr.msk.bf16.mxu0 %vm280_vm0, %v3396_v45 }
  0x87   : > { %2918 = vmatprep.subr.bf16.mxu0 %v3200_v15 }
  0x8a   : > { %2919 = vmatpush3.bf16.msra.mxu0 %v3200_v15 }
  0x8b   : > { %2928 = vmatprep.subr.bf16.mxu0 %v3201_v17 }
  0x8d   : > { %2913 = vmatmul.mubr.msk.bf16.gmra.mrb[4].mxu0 %vm280_vm0, %v1006_v18 }
  0x8e   : > { %2920 = vmatprep.mubr.msk.bf16.mxu0 %vm280_vm0, %v3350_v21  ;;  %v1230_v21 = vld [vmem:[#allocation2 + $0x92] sm:$0xff] }
  0x8f   : > { %v1234_v23 = vpack.c.bf16 %v1230_v21, %v887_v12 }
  0x95   : > { %2921 = vmatmul.mubr.msk.bf16.vlgmr.msra.gmra.mrb[0].mxu0 %vm280_vm0, %v3358_v24  ;;  %v3203_v24 = vld [vmem:[%s3689_s4 + $0x10] sm:$0xff]  }
  0x96   : > { %2929 = vmatpush3.bf16.msra.mxu0 %v3201_v17  ;;  %2924 = vmatprep.mubr.msk.bf16.mxu0 %vm280_vm0, %v3377_v31 }
  0x97   : > { %2930 = vmatprep.subr.bf16.mxu0 %v3202_v19  ;;  %2940 = vmatprep.subr.bf16.mxu1 %v3203_v24 }
  0x98   : > { %2941 = vmatpush3.bf16.msra.mxu1 %v3203_v24 }
  0x99   : > { %2942 = vmatprep.subr.bf16.mxu1 %v3204_v25 }
  0x9a   : > { %2931 = vmatpush3.bf16.msra.mxu0 %v3202_v19  ;;  %v3208_v19 = vld [vmem:[%s3689_s4 + $0x28] sm:$0xff]  }
  0x9c   : > { %2943 = vmatpush3.bf16.msra.mxu1 %v3204_v25 }
  0x9d   : > { %2925 = vmatmul.mubr.msk.bf16.gmra.mrb[4].mxu0 %vm280_vm0, %v1120_v22  ;;  %2952 = vmatprep.subr.bf16.mxu1 %v3205_v26  ;;  %v3209_v22 = vld [vmem:[%s3689_s4 + $0x30] sm:$0xff]  }
  0x9e   : > { %2932 = vmatprep.mubr.msk.bf16.mxu0 %vm280_vm0, %v3401_v51 }
  0xa5   : > { %2933 = vmatmul.mubr.msk.bf16.vlgmr.msra.gmra.mrb[0].mxu0 %vm280_vm0, %v3403_v52 }
  0xa6   : > { %2936 = vmatprep.mubr.msk.bf16.mxu0 %vm280_vm0, %v3415_v57  ;;  %v1420_v57 = vld [vmem:[#allocation3 + $0x1] sm:$0xff] }
  0xad   : > { %2937 = vmatmul.mubr.msk.bf16.gmra.mrb[4].mxu0 %vm280_vm0, %v1234_v23  ;;  %v1615_v23 = vld [vmem:[#allocation3 + $0x2] sm:$0xff] }
 0x178   : > { %v2934_v28 = vpop.f32.mrb[0].mxu0 }
 0x179   : > { %v1346_v30 = vmul.f32 %v2934_v28, %v2611_v27  ;;  %v1298_v31 = vpop.f32.mrb[1].mxu0 }
 0x17a   : > { %v1344_v32 = vmul.f32 %v2611_v27, %v1298_v31  ;;  %v2935_v33 = vpop.f32.mrb[2].mxu0 }
 0x17b   : > { %v1361_v34 = vadd.f32 %v2612_v29, %v1346_v30  ;;  %v1347_v35 = vmul.f32 %v2935_v33, %v2611_v27  ;;  %v1301_v36 = vpop.f32.mrb[3].mxu0  ;;  %v3210_v33 = vld [vmem:[%s3689_s4 + $0x38] sm:$0xff]  }
 0x17c   : > { %v1359_v37 = vadd.f32 %v2612_v29, %v1344_v32  ;;  %v1345_v38 = vmul.f32 %v2611_v27, %v1301_v36 }
 0x17d   : > { %v1369_v39 = vmax.f32 %v1361_v34, 0.0  ;;  %v1362_v40 = vadd.f32 %v2612_v29, %v1347_v35  ;;  %v3211_v35 = vld [vmem:[%s3689_s4 + $0x40] sm:$0xff]  }
 0x17e   : > { %v1367_v41 = vmax.f32 %v1359_v37, 0.0  ;;  %v1360_v42 = vadd.f32 %v2612_v29, %v1345_v38 }
 0x17f   : > { %1398 = vst.msk [vmem:[#allocation3 + $0x31] sm:$0xff] %vm280_vm0, %v1369_v39  ;;  %v1370_v43 = vmax.f32 %v1362_v40, 0.0 }
 0x180   : > { %1396 = vst.msk [vmem:[#allocation3 + $0x11] sm:$0xff] %vm280_vm0, %v1367_v41  ;;  %v1368_v44 = vmax.f32 %v1360_v42, 0.0  ;;  %v2938_v45 = vpop.f32.mrb[4].mxu0  ;;  %v3212_v41 = vld [vmem:[%s3689_s4 + $0x48] sm:$0xff]  }
 0x181   : > { %1399 = vst.msk [vmem:[#allocation3 + $0x41] sm:$0xff] %vm280_vm0, %v1370_v43  ;;  %v1350_v46 = vmul.f32 %v2938_v45, %v2611_v27  ;;  %v1314_v47 = vpop.f32.mrb[5].mxu0  ;;  %v3213_v43 = vld [vmem:[%s3689_s4 + $0x50] sm:$0xff]  }
 0x182   : > { %1397 = vst.msk [vmem:[#allocation3 + $0x21] sm:$0xff] %vm280_vm0, %v1368_v44  ;;  %v1348_v48 = vmul.f32 %v2611_v27, %v1314_v47  ;;  %v2939_v49 = vpop.f32.mrb[6].mxu0 }
 0x183   : > { %v1365_v50 = vadd.f32 %v2612_v29, %v1350_v46  ;;  %v1351_v51 = vmul.f32 %v2939_v49, %v2611_v27  ;;  %v1317_v52 = vpop.f32.mrb[7].mxu0 }
 0x184   : > { %v1363_v53 = vadd.f32 %v2612_v29, %v1348_v48  ;;  %v1349_v54 = vmul.f32 %v2611_v27, %v1317_v52  ;;  %v3214_v48 = vld [vmem:[%s3689_s4 + $0x58] sm:$0xff]  }
 0x185   : > { %v1373_v55 = vmax.f32 %v1365_v50, 0.0  ;;  %v1366_v56 = vadd.f32 %v2612_v29, %v1351_v51  ;;  %v3215_v50 = vld [vmem:[%s3689_s4 + $0x60] sm:$0xff]  }
 0x186   : > { %v1371_v58 = vmax.f32 %v1363_v53, 0.0  ;;  %v1364_v59 = vadd.f32 %v2612_v29, %v1349_v54  ;;  %v3513_v1 = vld [vmem:[#allocation3 + $0x31] sm:$0xff] }
 0x187   : > { %1402 = vst.msk [vmem:[#allocation3 + $0x71] sm:$0xff] %vm280_vm0, %v1373_v55  ;;  %v1374_v60 = vmax.f32 %v1366_v56, 0.0  ;;  %v3506_v61 = vld [vmem:[#allocation3 + $0x11] sm:$0xff]  ;;  %v3216_v55 = vld [vmem:[%s3689_s4 + $0x68] sm:$0xff]  }
 0x188   : > { %1400 = vst.msk [vmem:[#allocation3 + $0x51] sm:$0xff] %vm280_vm0, %v1371_v58  ;;  %v1372_v62 = vmax.f32 %v1364_v59, 0.0  ;;  %v1428_v63 = vpack.c.bf16 %v3506_v61, %v1420_v57  ;;  %v3529_v5 = vld [vmem:[#allocation3 + $0x41] sm:$0xff]  ;;  %v1405_v9 = vld [vmem:[#allocation3 + $0x10] sm:$0xff] }
 0x189   : > { %1403 = vst.msk [vmem:[#allocation3 + $0x81] sm:$0xff] %vm280_vm0, %v1374_v60  ;;  %v3511_v0 = vld [vmem:[#allocation3 + $0x21] sm:$0xff]  ;;  %v1412_v13 = vpack.c.bf16 %v1405_v9, %v1404_v8  ;;  %v1407_v16 = vld [vmem:[#allocation3 + $0x30] sm:$0xff]  ;;  %v1852_v47 = vpack.c.bf16 %v3529_v5, %v3513_v1  ;;  %v3218_v60 = vld [vmem:[%s3689_s4 + $0x78] sm:$0xff]  }
 0x18a   : > { %1401 = vst.msk [vmem:[#allocation3 + $0x61] sm:$0xff] %vm280_vm0, %v1372_v62  ;;  %2944 = vmatprep.mubr.msk.bf16.mxu1 %vm280_vm0, %v1428_v63  ;;  %v3519_v2 = vpack.c.bf16 %v3513_v1, %v3511_v0  ;;  %v1406_v14 = vld [vmem:[#allocation3 + $0x20] sm:$0xff]  ;;  %v1616_v24 = vld [vmem:[#allocation3 + $0x12] sm:$0xff]  ;;  %v1851_v46 = vpack.c.bf16 %v3511_v0, %v3506_v61  ;;  %v3220_v0 = vld [vmem:[%s3689_s4 + $0x88] sm:$0xff]  }
 0x18b   : > { %v3550_v17 = vpack.c.bf16 %v1407_v16, %v1406_v14  ;;  %v1408_v18 = vld [vmem:[#allocation3 + $0x40] sm:$0xff]  ;;  %v1623_v27 = vpack.c.bf16 %v1616_v24, %v1615_v23  ;;  %v1618_v30 = vld [vmem:[#allocation3 + $0x32] sm:$0xff]  ;;  %v1737_v39 = vpack.c.bf16 %v1406_v14, %v1405_v9 }
 0x18c   : > { %2945 = vmatmul.mubr.msk.bf16.vlgmr.msra.gmra.mrb[0].mxu1 %vm280_vm0, %v3519_v2  ;;  %v1617_v28 = vld [vmem:[#allocation3 + $0x22] sm:$0xff]  ;;  %v1738_v40 = vpack.c.bf16 %v1408_v18, %v1407_v16  ;;  %v3217_v57 = vld [vmem:[%s3689_s4 + $0x70] sm:$0xff]  }
 0x18d   : > { %2953 = vmatpush3.bf16.msra.mxu1 %v3205_v26  ;;  %v3569_v31 = vpack.c.bf16 %v1618_v30, %v1617_v28  ;;  %v1619_v32 = vld [vmem:[#allocation3 + $0x42] sm:$0xff]  ;;  %v1965_v53 = vpack.c.bf16 %v1617_v28, %v1616_v24  ;;  %v2079_v62 = vld [vmem:[#allocation3 + $0x90] sm:$0xff] }
 0x18e   : > { %2954 = vmatprep.subr.bf16.mxu1 %v3206_v3  ;;  %v3539_v11 = vld [vmem:[#allocation3 + $0x71] sm:$0xff]  ;;  %v1966_v54 = vpack.c.bf16 %v1619_v32, %v1618_v30  ;;  %v3219_v61 = vld [vmem:[%s3689_s4 + $0x80] sm:$0xff]  }
 0x18f   : > { %v3531_v6 = vld [vmem:[#allocation3 + $0x51] sm:$0xff] }
 0x190   : > { %v3535_v7 = vpack.c.bf16 %v3531_v6, %v3529_v5  ;;  %v1409_v15 = vld [vmem:[#allocation3 + $0x50] sm:$0xff]  ;;  %v1736_v44 = vld [vmem:[#allocation3 + $0x80] sm:$0xff] }
 0x191   : > { %v3537_v10 = vld [vmem:[#allocation3 + $0x61] sm:$0xff]  ;;  %2955 = vmatpush3.bf16.msra.mxu1 %v3206_v3  ;;  %v3555_v20 = vpack.c.bf16 %v1409_v15, %v1408_v18  ;;  %v1411_v25 = vld [vmem:[#allocation3 + $0x70] sm:$0xff]  ;;  %v2083_v63 = vpack.c.bf16 %v2079_v62, %v1736_v44  ;;  %v2699_v5 = vld [vmem:[%s3690_s5] ss:$0 sm:$0xff] }
 0x192   : > { %2948 = vmatprep.mubr.msk.bf16.mxu1 %vm280_vm0, %v3535_v7  ;;  %v3545_v12 = vpack.c.bf16 %v3539_v11, %v3537_v10  ;;  %2964 = vmatprep.subr.bf16.mxu1 %v3207_v4  ;;  %v1410_v21 = vld [vmem:[#allocation3 + $0x60] sm:$0xff]  ;;  %v1620_v29 = vld [vmem:[#allocation3 + $0x52] sm:$0xff]  ;;  %v1740_v45 = vpack.c.bf16 %v1736_v44, %v1411_v25  ;;  %v1853_v49 = vpack.c.bf16 %v3537_v10, %v3531_v6 }
 0x193   : > { %v3564_v26 = vpack.c.bf16 %v1411_v25, %v1410_v21  ;;  %v3574_v34 = vpack.c.bf16 %v1620_v29, %v1619_v32  ;;  %v1621_v36 = vld [vmem:[#allocation3 + $0x62] sm:$0xff]  ;;  %v1622_v37 = vld [vmem:[#allocation3 + $0x72] sm:$0xff]  ;;  %v1739_v42 = vpack.c.bf16 %v1410_v21, %v1409_v15 }
 0x194   : > { %2949 = vmatmul.mubr.msk.bf16.gmra.mrb[4].mxu1 %vm280_vm0, %v3545_v12  ;;  %v3583_v38 = vpack.c.bf16 %v1622_v37, %v1621_v36  ;;  %v1850_v51 = vld [vmem:[#allocation3 + $0x81] sm:$0xff]  ;;  %v1967_v56 = vpack.c.bf16 %v1621_v36, %v1620_v29  ;;  %v2193_v1 = vld [vmem:[#allocation3 + $0x91] sm:$0xff] }
 0x195   : > { %2956 = vmatprep.mubr.msk.bf16.mxu1 %vm280_vm0, %v1412_v13  ;;  %v1854_v52 = vpack.c.bf16 %v1850_v51, %v3539_v11  ;;  %v1964_v58 = vld [vmem:[#allocation3 + $0x82] sm:$0xff]  ;;  %v2197_v3 = vpack.c.bf16 %v2193_v1, %v1850_v51 }
 0x196   : > { %v1968_v59 = vpack.c.bf16 %v1964_v58, %v1622_v37 }
 0x19c   : > { %2957 = vmatmul.mubr.msk.bf16.vlgmr.msra.gmra.mrb[0].mxu1 %vm280_vm0, %v3550_v17 }
 0x19d   : > { %2965 = vmatpush3.bf16.msra.mxu1 %v3207_v4  ;;  %2960 = vmatprep.mubr.msk.bf16.mxu1 %vm280_vm0, %v3555_v20 }
 0x19e   : > { %2966 = vmatprep.subr.bf16.mxu1 %v3208_v19 }
 0x1a1   : > { %2967 = vmatpush3.bf16.msra.mxu1 %v3208_v19 }
 0x1a2   : > { %2976 = vmatprep.subr.bf16.mxu1 %v3209_v22 }
 0x1a4   : > { %2961 = vmatmul.mubr.msk.bf16.gmra.mrb[4].mxu1 %vm280_vm0, %v3564_v26 }
 0x1a5   : > { %2968 = vmatprep.mubr.msk.bf16.mxu1 %vm280_vm0, %v1623_v27 }
 0x1ac   : > { %2969 = vmatmul.mubr.msk.bf16.vlgmr.msra.gmra.mrb[0].mxu1 %vm280_vm0, %v3569_v31 }
 0x1ad   : > { %2977 = vmatpush3.bf16.msra.mxu1 %v3209_v22  ;;  %2972 = vmatprep.mubr.msk.bf16.mxu1 %vm280_vm0, %v3574_v34 }
 0x1ae   : > { %2978 = vmatprep.subr.bf16.mxu1 %v3210_v33 }
 0x1b1   : > { %2979 = vmatpush3.bf16.msra.mxu1 %v3210_v33 }
 0x1b2   : > { %2988 = vmatprep.subr.bf16.mxu1 %v3211_v35 }
 0x1b4   : > { %2973 = vmatmul.mubr.msk.bf16.gmra.mrb[4].mxu1 %vm280_vm0, %v3583_v38 }
 0x1b5   : > { %2980 = vmatprep.mubr.msk.bf16.mxu1 %vm280_vm0, %v1737_v39 }
 0x1bc   : > { %2981 = vmatmul.mubr.msk.bf16.vlgmr.msra.gmra.mrb[0].mxu1 %vm280_vm0, %v1738_v40 }
 0x1bd   : > { %2989 = vmatpush3.bf16.msra.mxu1 %v3211_v35  ;;  %2984 = vmatprep.mubr.msk.bf16.mxu1 %vm280_vm0, %v1739_v42 }
 0x1be   : > { %2990 = vmatprep.subr.bf16.mxu1 %v3212_v41 }
 0x1c1   : > { %2991 = vmatpush3.bf16.msra.mxu1 %v3212_v41 }
 0x1c2   : > { %3000 = vmatprep.subr.bf16.mxu1 %v3213_v43 }
 0x1c4   : > { %2985 = vmatmul.mubr.msk.bf16.gmra.mrb[4].mxu1 %vm280_vm0, %v1740_v45 }
 0x1c5   : > { %2992 = vmatprep.mubr.msk.bf16.mxu1 %vm280_vm0, %v1851_v46 }
 0x1cc   : > { %2993 = vmatmul.mubr.msk.bf16.vlgmr.msra.gmra.mrb[0].mxu1 %vm280_vm0, %v1852_v47 }
 0x1cd   : > { %3001 = vmatpush3.bf16.msra.mxu1 %v3213_v43  ;;  %2996 = vmatprep.mubr.msk.bf16.mxu1 %vm280_vm0, %v1853_v49 }
 0x1ce   : > { %3002 = vmatprep.subr.bf16.mxu1 %v3214_v48 }
 0x1d1   : > { %3003 = vmatpush3.bf16.msra.mxu1 %v3214_v48 }
 0x1d2   : > { %3012 = vmatprep.subr.bf16.mxu1 %v3215_v50 }
 0x1d4   : > { %2997 = vmatmul.mubr.msk.bf16.gmra.mrb[4].mxu1 %vm280_vm0, %v1854_v52 }
 0x1d5   : > { %3004 = vmatprep.mubr.msk.bf16.mxu1 %vm280_vm0, %v1965_v53 }
 0x1dc   : > { %3005 = vmatmul.mubr.msk.bf16.vlgmr.msra.gmra.mrb[0].mxu1 %vm280_vm0, %v1966_v54 }
 0x1dd   : > { %3013 = vmatpush3.bf16.msra.mxu1 %v3215_v50  ;;  %3008 = vmatprep.mubr.msk.bf16.mxu1 %vm280_vm0, %v1967_v56 }
 0x1de   : > { %3014 = vmatprep.subr.bf16.mxu1 %v3216_v55 }
 0x1e1   : > { %3015 = vmatpush3.bf16.msra.mxu1 %v3216_v55 }
 0x1e2   : > { %3024 = vmatprep.subr.bf16.mxu1 %v3217_v57 }
 0x1e4   : > { %3009 = vmatmul.mubr.msk.bf16.gmra.mrb[4].mxu1 %vm280_vm0, %v1968_v59 }
 0x1e5   : > { %3016 = vmatprep.mubr.msk.bf16.mxu1 %vm280_vm0, %v3550_v17 }
 0x1ec   : > { %3017 = vmatmul.mubr.msk.bf16.vlgmr.msra.gmra.mrb[0].mxu1 %vm280_vm0, %v3555_v20 }
 0x1ed   : > { %3025 = vmatpush3.bf16.msra.mxu1 %v3217_v57  ;;  %3020 = vmatprep.mubr.msk.bf16.mxu1 %vm280_vm0, %v3564_v26 }
 0x1ee   : > { %3026 = vmatprep.subr.bf16.mxu1 %v3218_v60 }
 0x1f1   : > { %3027 = vmatpush3.bf16.msra.mxu1 %v3218_v60 }
 0x1f2   : > { %3036 = vmatprep.subr.bf16.mxu1 %v3219_v61 }
 0x1f4   : > { %3021 = vmatmul.mubr.msk.bf16.gmra.mrb[4].mxu1 %vm280_vm0, %v2083_v63 }
 0x1f5   : > { %3028 = vmatprep.mubr.msk.bf16.mxu1 %vm280_vm0, %v3519_v2  ;;  %v2307_v2 = vld [vmem:[#allocation3 + $0x92] sm:$0xff] }
 0x1f6   : > { %v2311_v4 = vpack.c.bf16 %v2307_v2, %v1964_v58 }
 0x1fc   : > { %3029 = vmatmul.mubr.msk.bf16.vlgmr.msra.gmra.mrb[0].mxu1 %vm280_vm0, %v3535_v7  ;;  %v2700_v7 = vld [vmem:[%s3691_s6] ss:$0 sm:$0xff] }
 0x1fd   : > { %3037 = vmatpush3.bf16.msra.mxu1 %v3219_v61  ;;  %3032 = vmatprep.mubr.msk.bf16.mxu1 %vm280_vm0, %v3545_v12 }
 0x1fe   : > { %3038 = vmatprep.subr.bf16.mxu1 %v3220_v0 }
 0x201   : > { %3039 = vmatpush3.bf16.msra.mxu1 %v3220_v0 }
 0x204   : > { %3033 = vmatmul.mubr.msk.bf16.gmra.mrb[4].mxu1 %vm280_vm0, %v2197_v3 }
 0x205   : > { %3040 = vmatprep.mubr.msk.bf16.mxu1 %vm280_vm0, %v3569_v31 }
 0x20c   : > { %3041 = vmatmul.mubr.msk.bf16.vlgmr.msra.gmra.mrb[0].mxu1 %vm280_vm0, %v3574_v34 }
 0x20d   : > { %3044 = vmatprep.mubr.msk.bf16.mxu1 %vm280_vm0, %v3583_v38 }
 0x214   : > { %3045 = vmatmul.mubr.msk.bf16.gmra.mrb[4].mxu1 %vm280_vm0, %v2311_v4 }
 0x2df   : > { %v3042_v6 = vpop.f32.mrb[0].mxu1 }
 0x2e0   : > { %v2423_v8 = vmul.f32 %v3042_v6, %v2699_v5  ;;  %v2375_v9 = vpop.f32.mrb[1].mxu1 }
 0x2e1   : > { %v2421_v10 = vmul.f32 %v2699_v5, %v2375_v9  ;;  %v3043_v11 = vpop.f32.mrb[2].mxu1 }
 0x2e2   : > { %v2438_v12 = vadd.f32 %v2700_v7, %v2423_v8  ;;  %v2424_v13 = vmul.f32 %v3043_v11, %v2699_v5  ;;  %v2378_v14 = vpop.f32.mrb[3].mxu1 }
 0x2e3   : > { %v2436_v15 = vadd.f32 %v2700_v7, %v2421_v10  ;;  %v2422_v16 = vmul.f32 %v2699_v5, %v2378_v14 }
 0x2e4   : > { %v2446_v17 = vmax.f32 %v2438_v12, 0.0  ;;  %v2439_v18 = vadd.f32 %v2700_v7, %v2424_v13 }
 0x2e5   : > { %v2444_v19 = vmax.f32 %v2436_v15, 0.0  ;;  %v2437_v20 = vadd.f32 %v2700_v7, %v2422_v16 }
 0x2e6   : > { %2455 = vst.msk [vmem:[%s3664_s29 + $0x10] sm:$0xff] %vm2452_vm2, %v2446_v17  ;;  %v2447_v22 = vmax.f32 %v2439_v18, 0.0 }
 0x2e7   : > { %2453 = vst.msk [vmem:[%s3664_s29] sm:$0xff] %vm2452_vm2, %v2444_v19  ;;  %v2445_v21 = vmax.f32 %v2437_v20, 0.0  ;;  %v3046_v23 = vpop.f32.mrb[4].mxu1 }
 0x2e8   : > { %2456 = vst.msk [vmem:[%s3664_s29 + $0x18] sm:$0xff] %vm2452_vm2, %v2447_v22  ;;  %v2427_v24 = vmul.f32 %v3046_v23, %v2699_v5  ;;  %v2391_v25 = vpop.f32.mrb[5].mxu1 }
 0x2e9   : > { %2454 = vst.msk [vmem:[%s3664_s29 + $0x8] sm:$0xff] %vm2452_vm2, %v2445_v21  ;;  %v2425_v26 = vmul.f32 %v2699_v5, %v2391_v25  ;;  %v3047_v27 = vpop.f32.mrb[6].mxu1 }
 0x2ea   : > { %v2442_v28 = vadd.f32 %v2700_v7, %v2427_v24  ;;  %v2428_v29 = vmul.f32 %v3047_v27, %v2699_v5  ;;  %v2394_v30 = vpop.f32.mrb[7].mxu1 }
 0x2eb   : > { %v2440_v31 = vadd.f32 %v2700_v7, %v2425_v26  ;;  %v2426_v32 = vmul.f32 %v2699_v5, %v2394_v30 }
 0x2ec   : > { %v2450_v33 = vmax.f32 %v2442_v28, 0.0  ;;  %v2443_v34 = vadd.f32 %v2700_v7, %v2428_v29 }
 0x2ed   : > { %v2448_v35 = vmax.f32 %v2440_v31, 0.0  ;;  %v2441_v36 = vadd.f32 %v2700_v7, %v2426_v32 }
 0x2ee   : > { %2459 = vst.msk [vmem:[%s3664_s29 + $0x30] sm:$0xff] %vm2452_vm2, %v2450_v33  ;;  %v2451_v37 = vmax.f32 %v2443_v34, 0.0 }
 0x2ef   : > { %2457 = vst.msk [vmem:[%s3664_s29 + $0x20] sm:$0xff] %vm2452_vm2, %v2448_v35  ;;  %v2449_v38 = vmax.f32 %v2441_v36, 0.0 }
 0x2f0   : > { %2460 = vst.msk [vmem:[%s3664_s29 + $0x38] sm:$0xff] %vm2452_vm2, %v2451_v37 }
 0x2f1   : > { %2458 = vst.msk [vmem:[%s3664_s29 + $0x28] sm:$0xff] %vm2452_vm2, %v2449_v38 }
 0x2f2 PF: > { %s17_s24 = sadd.s32 1, %s3227_s24  }
 0x2f3   : > { %p14_p4 = scmp.ge.s32.totalorder %s17_s24, 4  }
 0x2f5   :  { %16 = sbr.rel (!%p14_p4) target bundleno = 1 (0x1), region = 98 }

</bundles_post_ra>
